<compile_context>
chip_gen: v7x
topology: tpu7x:2x2x1
jax: 0.10.0
libtpu: 0.0.40
codegen_flags: <defaults>
</compile_context>

<pallas_src>
import math
import numpy as np
import jax
import jax.numpy as jnp
from jax.experimental import pallas as pl
from jax.experimental.pallas import tpu as pltpu

# ----------------------------- configuration -----------------------------
B = 2            # batch
IMG = 64         # image H = W
CIN = 3          # input channels
PATCH = 16       # patch size of the (toy) ViT image encoder
HP = IMG // PATCH            # 4  embedding spatial size
N = HP * HP                  # 16 tokens of the image embedding
D = 32           # embedding dim
MLP_H = 64       # MLP hidden dim
D_UP = 8         # hypernetwork / upscaled-embedding channel dim
UPSC = 4         # low-res mask = 4x embedding resolution (SAM convention)
UPS2 = UPSC * UPSC           # 16
NUM_MOD = 4      # number of imaging modalities
T = 3            # decoder tokens per batch: 1 mask token + 2 box corners
PDIM = PATCH * PATCH * CIN   # 768
SCALE = 1.0 / math.sqrt(D)


# ----------------------------- host-side constants -----------------------------
def _bilinear_matrix(out_size, in_size):
    # matches torch F.interpolate(mode='bilinear', align_corners=False)
    scale = in_size / out_size
    i = np.arange(out_size)
    src = (i + 0.5) * scale - 0.5
    src = np.maximum(src, 0.0)
    idx0 = np.minimum(np.floor(src).astype(np.int64), in_size - 1)
    idx1 = np.minimum(idx0 + 1, in_size - 1)
    lam1 = (src - idx0).astype(np.float32)
    lam0 = 1.0 - lam1
    A = np.zeros((out_size, in_size), np.float32)
    np.add.at(A, (i, idx0), lam0)
    np.add.at(A, (i, idx1), lam1)
    return A


_PIDX = np.arange(N)
_AH_BIL = _bilinear_matrix(IMG, HP * UPSC)          # (64, 16) row interp
_AWT_BIL = _bilinear_matrix(IMG, HP * UPSC).T       # (16, 64) col interp (transposed)

# AH for all 4 sub-rows concatenated along columns: col index = sy*N + n
_AH_CAT = jnp.asarray(np.concatenate(
    [_AH_BIL[:, (_PIDX // HP) * UPSC + sy] for sy in range(UPSC)], axis=1))  # (64, 64)

# AWT per (batch, sx), zero-padded into that batch's 64-lane output block
_AWTPAD_NP = np.zeros((B * UPSC * N, B * IMG), np.float32)
for _b in range(B):
    for _sx in range(UPSC):
        _r0 = (_b * UPSC + _sx) * N
        _AWTPAD_NP[_r0:_r0 + N, _b * IMG:(_b + 1) * IMG] = \
            _AWT_BIL[(_PIDX % HP) * UPSC + _sx, :]
_AWTPAD = jnp.asarray(_AWTPAD_NP)                   # (128, 128)

# group-sum (k = s*D_UP + d -> s), replication (d -> s*D_UP + d), batch expand
_GSUM = jnp.asarray(np.kron(np.eye(UPS2, dtype=np.float32),
                            np.ones((D_UP, 1), np.float32)))      # (128, 16)
_REP = jnp.asarray(np.tile(np.eye(D_UP, dtype=np.float32), (1, UPS2)))  # (8, 128)
_EXPAND = jnp.asarray(np.kron(np.eye(B, dtype=np.float32),
                              np.ones((N, 1), np.float32)))       # (32, 2)

# additive block mask so each batch's tokens only attend to its own image tokens
_ATTN_BIAS = jnp.asarray(np.where(
    np.kron(np.eye(B, dtype=np.float32), np.ones((T, N), np.float32)) > 0,
    0.0, -1e9).astype(np.float32))                                 # (6, 32)


# ----------------------------- operand-packing slabs -----------------------------
class _Slab:
    """Packs many small 2-D operands into one (rows, 128) slab; static views."""

    def __init__(self, lanes, row_align):
        self.lanes, self.align = lanes, row_align
        self.blocks = {}
        self.rows = 0

    def add(self, name, shape):
        r, c = shape
        assert c <= self.lanes
        self.blocks[name] = (self.rows, r, c)
        self.rows += ((r + self.align - 1) // self.align) * self.align

    def shape(self):
        return (self.rows, self.lanes)

    def pack(self, arrays, dtype):
        slab = jnp.zeros(self.shape(), dtype)
        for name, (r0, r, c) in self.blocks.items():
            slab = slab.at[r0:r0 + r, 0:c].set(jnp.asarray(arrays[name], dtype))
        return slab

    def read(self, ref, name):
        r0, r, c = self.blocks[name]
        return ref[r0:r0 + r, 0:c]


_WLAY = _Slab(128, 16)          # bf16 matmul weights / MXU constants
for _nm, _sh in [("wp", (PDIM, D)), ("w1", (D, MLP_H)), ("w2", (MLP_H, D)),
                 ("wt1", (D, MLP_H)), ("wt2", (MLP_H, D)),
                 ("wh1", (D, MLP_H)), ("wh2", (MLP_H, D_UP)),
                 ("wu", (D, UPS2 * D_UP)),
                 ("gsum", (UPS2 * D_UP, UPS2)), ("rep", (D_UP, UPS2 * D_UP)),
                 ("expand", (B * N, B)), ("ah_cat", (IMG, UPSC * N))]:
    _WLAY.add(_nm, _sh)

_FLAY = _Slab(128, 8)           # f32 biases / VPU constants
for _nm, _sh in [("bp", (1, D)), ("b1", (1, MLP_H)), ("b2n", (1, D)),
                 ("bt1", (1, MLP_H)), ("bt2", (1, D)),
                 ("bh1", (1, MLP_H)), ("bh2", (1, D_UP)),
                 ("bu", (1, UPS2 * D_UP)), ("mask_token", (1, D)),
                 ("pe_rep", (B * N, D)), ("attn_bias", (B * T, B * N)),
                 ("awtpad", (B * UPSC * N, B * IMG))]:
    _FLAY.add(_nm, _sh)


# ----------------------------- fused Pallas kernel -----------------------------
def _medsam_kernel(patches_ref, dyn_ref, w_ref, f_ref, out_ref):
    f32 = jnp.float32
    bf16 = jnp.bfloat16
    wv = lambda name: _WLAY.read(w_ref, name)
    fv = lambda name: _FLAY.read(f_ref, name)

    # ---- per-call inputs (packed, tile-aligned rows) ----
    sparse = dyn_ref[0:2 * B, :]             # (4, D)  box-corner embeddings
    enc_mod = dyn_ref[8:8 + B, :]            # (B, D)  encoder modality rows
    dec_mod = dyn_ref[16:16 + B, :]          # (B, D)  decoder modality rows

    # broadcast encoder modality embedding over each batch's N tokens (MXU, not XLU)
    enc_big = jnp.dot(wv("expand"), enc_mod.astype(bf16),
                      preferred_element_type=f32)                     # (B*N, D)

    # ---- image encoder: patch embed + modality + GELU MLP ----
    x = jnp.dot(patches_ref[...], wv("wp"), preferred_element_type=f32)
    x = x + fv("bp") + enc_big                                        # (B*N, D)
    h = jax.nn.gelu(jnp.dot(x.astype(bf16), wv("w1"),
                            preferred_element_type=f32) + fv("b1"))
    # b2n = b2 + no_mask_embed  (dense prompt folded into the bias host-side)
    src = x + jnp.dot(h.astype(bf16), wv("w2"),
                      preferred_element_type=f32) + fv("b2n")         # (B*N, D)
    src_bf = src.astype(bf16)

    # ---- decoder token assembly (registers only, no scratch) ----
    mask_tok = fv("mask_token")
    tok = jnp.concatenate([mask_tok + dec_mod[0:1], sparse[0:2],
                           mask_tok + dec_mod[1:2], sparse[2:4]], axis=0)  # (B*T, D)

    # ---- cross attention: tokens -> image (block-masked over both batches) ----
    k = src + fv("pe_rep")
    scores = jax.lax.dot_general(tok.astype(bf16), k.astype(bf16),
                                 (((1,), (1,)), ((), ())),
                                 preferred_element_type=f32) * SCALE  # (B*T, B*N)
    scores = scores + fv("attn_bias")
    scores = scores - jnp.max(scores, axis=-1, keepdims=True)
    p = jnp.exp(scores)
    p = p * pl.reciprocal(jnp.sum(p, axis=-1, keepdims=True), approx=True)
    tok = tok + jnp.dot(p.astype(bf16), src_bf, preferred_element_type=f32)

    # ---- token MLP ----
    th = jax.nn.gelu(jnp.dot(tok.astype(bf16), wv("wt1"),
                             preferred_element_type=f32) + fv("bt1"))
    tok = tok + jnp.dot(th.astype(bf16), wv("wt2"),
                        preferred_element_type=f32) + fv("bt2")

    # ---- hypernetwork on the two mask tokens (rows 0 and T) ----
    mtok = jnp.concatenate([tok[0:1], tok[T:T + 1]], axis=0)          # (B, D)
    hh = jax.nn.gelu(jnp.dot(mtok.astype(bf16), wv("wh1"),
                             preferred_element_type=f32) + fv("bh1"))
    hyper = jnp.dot(hh.astype(bf16), wv("wh2"),
                    preferred_element_type=f32) + fv("bh2")           # (B, D_UP)

    # ---- upscale projection + per-subpixel contraction ----
    up = jnp.dot(src_bf, wv("wu"), preferred_element_type=f32) + fv("bu")  # (B*N, 128)
    hb = jnp.dot(wv("expand"), hyper.astype(bf16),
                 preferred_element_type=f32)                          # (B*N, D_UP)
    hyper_big = jnp.dot(hb.astype(bf16), wv("rep"),
                        preferred_element_type=f32)                   # (B*N, 128)
    mask = jnp.dot((up * hyper_big).astype(bf16), wv("gsum"),
                   preferred_element_type=f32)                        # (B*N, 16)

    # ---- fused bilinear upsample; lane-dense (IMG, B*IMG) output ----
    awtpad = fv("awtpad")                                             # (B*U*N, B*IMG)
    pieces = []
    for sy in range(UPSC):
        acc = None
        for bi in range(B):
            for sx in range(UPSC):
                s = sy * UPSC + sx
                col = mask[bi * N:(bi + 1) * N, s:s + 1]              # (N, 1)
                r0 = (bi * UPSC + sx) * N
                term = col * awtpad[r0:r0 + N, :]                     # (N, B*IMG)
                acc = term if acc is None else acc + term
        pieces.append(acc)
    inner = jnp.concatenate(pieces, axis=0)                           # (U*N, B*IMG)
    out_ref[...] = jnp.dot(wv("ah_cat"), inner.astype(bf16),
                           preferred_element_type=f32)                # (IMG, B*IMG)


def fused_medsam_call(patches, dyn, params):
    full = lambda shape: pl.BlockSpec(shape, lambda i: (0, 0))
    return pl.pallas_call(
        _medsam_kernel,
        out_shape=jax.ShapeDtypeStruct((IMG, B * IMG), jnp.float32),
        grid=(1,),
        in_specs=[full((B * N, PDIM)), full((24, D)),
                  full(_WLAY.shape()), full(_FLAY.shape())],
        out_specs=full((IMG, B * IMG)),
        compiler_params=pltpu.CompilerParams(
            dimension_semantics=("arbitrary",)),
    )(patches, dyn, params["wslab"], params["fslab"])


# ----------------------------- plain-JAX glue -----------------------------
def _pe_encoding(coords, gauss):
    # SAM PositionEmbeddingRandom: coords in [0,1], shape (..., 2)
    c = 2.0 * coords - 1.0
    c = c @ gauss                          # (..., D/2)
    c = 2.0 * jnp.pi * c
    return jnp.concatenate([jnp.sin(c), jnp.cos(c)], axis=-1)


def init_params(key):
    ks = jax.random.split(key, 16)
    s = 0.02
    f32 = jnp.float32
    rnd = lambda i, shape: jax.random.normal(ks[i], shape, f32) * s
    raw = {
        "wp": rnd(0, (PDIM, D)), "w1": rnd(1, (D, MLP_H)), "w2": rnd(2, (MLP_H, D)),
        "wt1": rnd(3, (D, MLP_H)), "wt2": rnd(4, (MLP_H, D)),
        "wh1": rnd(5, (D, MLP_H)), "wh2": rnd(6, (MLP_H, D_UP)),
        "wu": rnd(7, (D, UPS2 * D_UP)),
        "bp": jnp.zeros((1, D), f32), "b1": jnp.zeros((1, MLP_H), f32),
        "b2": jnp.zeros((1, D), f32), "bt1": jnp.zeros((1, MLP_H), f32),
        "bt2": jnp.zeros((1, D), f32), "bh1": jnp.zeros((1, MLP_H), f32),
        "bh2": jnp.zeros((1, D_UP), f32), "bu": jnp.zeros((1, UPS2 * D_UP), f32),
        "no_mask_embed": rnd(8, (1, D)), "mask_token": rnd(9, (1, D)),
    }
    pe_gauss = jax.random.normal(ks[10], (2, D // 2), f32)
    point_embed = rnd(11, (2, D))
    enc_mod_embed = rnd(12, (NUM_MOD, D))
    dec_mod_embed = rnd(13, (NUM_MOD, D))

    # frozen prompt-encoder dense positional-encoding grid (get_dense_pe)
    yy = (jnp.arange(HP, dtype=f32) + 0.5) / HP
    gy, gx = jnp.meshgrid(yy, yy, indexing="ij")
    coords = jnp.stack([gx, gy], axis=-1).reshape(N, 2)
    dense_pe = _pe_encoding(coords, pe_gauss)                     # (N, D)

    wvals = {"wp": raw["wp"], "w1": raw["w1"], "w2": raw["w2"],
             "wt1": raw["wt1"], "wt2": raw["wt2"], "wh1": raw["wh1"],
             "wh2": raw["wh2"], "wu": raw["wu"],
             "gsum": _GSUM, "rep": _REP, "expand": _EXPAND, "ah_cat": _AH_CAT}
    fvals = {"bp": raw["bp"], "b1": raw["b1"],
             "b2n": raw["b2"] + raw["no_mask_embed"],             # fold dense prompt
             "bt1": raw["bt1"], "bt2": raw["bt2"], "bh1": raw["bh1"],
             "bh2": raw["bh2"], "bu": raw["bu"],
             "mask_token": raw["mask_token"],
             "pe_rep": jnp.tile(dense_pe, (B, 1)),                # (B*N, D)
             "attn_bias": _ATTN_BIAS, "awtpad": _AWTPAD}
    return {
        "wslab": _WLAY.pack(wvals, jnp.bfloat16),
        "fslab": _FLAY.pack(fvals, jnp.float32),
        "pe_gauss": pe_gauss, "point_embed": point_embed,
        "enc_mod_embed": enc_mod_embed, "dec_mod_embed": dec_mod_embed,
    }


def medsam_forward(params, image, modality, box):
    """image: (B, CIN, H, W) float32; modality: (B,) int32; box: (B, 4)."""
    Bc, C, H, W_ = image.shape

    # patch extraction (channels-last patch vectors), bf16 for the MXU
    x = image.reshape(Bc, C, HP, PATCH, HP, PATCH)
    x = jnp.transpose(x, (0, 2, 4, 3, 5, 1))           # (B, HPy, HPx, ph, pw, C)
    patches = x.reshape(Bc * N, PDIM).astype(jnp.bfloat16)

    # frozen prompt encoder: box-corner sparse embeddings (tiny, plain JAX)
    box_f = jnp.asarray(box, jnp.float32)
    if box_f.ndim == 2:
        box_f = box_f[:, None, :]                       # (B, 1, 4)
    corners = box_f.reshape(Bc, 2, 2) + 0.5
    corners = corners / jnp.asarray([W_, H], jnp.float32)
    sparse = _pe_encoding(corners, params["pe_gauss"]) + params["point_embed"][None]
    sparse = sparse.reshape(Bc * 2, D)                  # (2B, D)

    # per-batch modality rows (trivial 2-row take; no repeat, no in-kernel gather)
    modality = jnp.asarray(modality, jnp.int32)
    enc_sel = params["enc_mod_embed"][modality]         # (B, D)
    dec_sel = params["dec_mod_embed"][modality]         # (B, D)

    z4 = jnp.zeros((4, D), jnp.float32)
    z6 = jnp.zeros((6, D), jnp.float32)
    dyn = jnp.concatenate([sparse, z4, enc_sel, z6, dec_sel, z6], axis=0)  # (24, D)

    out2 = fused_medsam_call(patches, dyn, params)      # (IMG, B*IMG)
    ori = out2.reshape(IMG, Bc, IMG).transpose(1, 0, 2)
    return ori[:, None, :, :]                           # (B, 1, IMG, IMG)


# ----------------------------- main -----------------------------
if __name__ == "__main__":
    key = jax.random.PRNGKey(0)
    kp, ki = jax.random.split(key)
    params = init_params(kp)

    image = jax.random.normal(ki, (B, CIN, IMG, IMG), jnp.float32)
    modality = jnp.array([0, 2], dtype=jnp.int32)
    box = jnp.array([[8.0, 8.0, 48.0, 48.0],
                     [4.0, 12.0, 40.0, 52.0]], dtype=jnp.float32)

    out = jax.jit(medsam_forward)(params, image, modality, box)
    out = jax.block_until_ready(out)
    assert out.shape == (B, 1, IMG, IMG), out.shape
    assert out.dtype == jnp.float32
    print("KERNEL_OK")
</pallas_src>

<mosaic_0001>
module attributes {stable_mosaic.version = 11 : i64} {
  func.func @_medsam_kernel(%arg0: i32, %arg1: memref<32x768xbf16, #tpu.memory_space<vmem>>, %arg2: memref<24x32xf32, #tpu.memory_space<vmem>>, %arg3: memref<1328x128xbf16, #tpu.memory_space<vmem>>, %arg4: memref<240x128xf32, #tpu.memory_space<vmem>>, %arg5: memref<64x128xf32, #tpu.memory_space<vmem>>) attributes {dimension_semantics = [#tpu.dimension_semantics<arbitrary>], iteration_bounds = array<i64: 1>, scalar_prefetch = 0 : i64, scratch_operands = 0 : i64, tpu.core_type = #tpu.core_type<tc>, window_params = [{pipeline_mode = #tpu.pipeline_mode<synchronous>, transform_indices = @transform_0, window_bounds = array<i64: 32, 768>}, {pipeline_mode = #tpu.pipeline_mode<synchronous>, transform_indices = @transform_1, window_bounds = array<i64: 24, 32>}, {pipeline_mode = #tpu.pipeline_mode<synchronous>, transform_indices = @transform_2, window_bounds = array<i64: 1328, 128>}, {pipeline_mode = #tpu.pipeline_mode<synchronous>, transform_indices = @transform_3, window_bounds = array<i64: 240, 128>}, {pipeline_mode = #tpu.pipeline_mode<synchronous>, transform_indices = @transform_4, window_bounds = array<i64: 64, 128>}]} {
    %c0 = arith.constant 0 : index
    %c0_0 = arith.constant 0 : index
    %0 = vector.load %arg2[%c0, %c0_0] : memref<24x32xf32, #tpu.memory_space<vmem>>, vector<4x32xf32>
    %c8 = arith.constant 8 : index
    %c0_1 = arith.constant 0 : index
    %1 = vector.load %arg2[%c8, %c0_1] : memref<24x32xf32, #tpu.memory_space<vmem>>, vector<2x32xf32>
    %c16 = arith.constant 16 : index
    %c0_2 = arith.constant 0 : index
    %2 = vector.load %arg2[%c16, %c0_2] : memref<24x32xf32, #tpu.memory_space<vmem>>, vector<2x32xf32>
    %c1232 = arith.constant 1232 : index
    %c0_3 = arith.constant 0 : index
    %3 = vector.load %arg3[%c1232, %c0_3] : memref<1328x128xbf16, #tpu.memory_space<vmem>>, vector<32x2xbf16>
    %4 = arith.truncf %1 : vector<2x32xf32> to vector<2x32xbf16>
    %cst = arith.constant dense<0.000000e+00> : vector<32x32xf32>
    %5 = tpu.matmul %3, %4, %cst {dimension_numbers = #tpu.dot_dimension_numbers<[1], [0], [0], [1], [0, 0, 1, 1], [], []>} : vector<32x2xbf16>, vector<2x32xbf16>, vector<32x32xf32> -> vector<32x32xf32>
    %c0_4 = arith.constant 0 : index
    %c0_5 = arith.constant 0 : index
    %6 = vector.load %arg1[%c0_4, %c0_5] : memref<32x768xbf16, #tpu.memory_space<vmem>>, vector<32x768xbf16>
    %c0_6 = arith.constant 0 : index
    %c0_7 = arith.constant 0 : index
    %7 = vector.load %arg3[%c0_6, %c0_7] : memref<1328x128xbf16, #tpu.memory_space<vmem>>, vector<768x32xbf16>
    %cst_8 = arith.constant dense<0.000000e+00> : vector<32x32xf32>
    %8 = tpu.matmul %6, %7, %cst_8 {dimension_numbers = #tpu.dot_dimension_numbers<[1], [0], [0], [1], [0, 0, 1, 1], [], []>} : vector<32x768xbf16>, vector<768x32xbf16>, vector<32x32xf32> -> vector<32x32xf32>
    %c0_9 = arith.constant 0 : index
    %c0_10 = arith.constant 0 : index
    %9 = vector.load %arg4[%c0_9, %c0_10] : memref<240x128xf32, #tpu.memory_space<vmem>>, vector<1x32xf32>
    %10 = vector.broadcast %9 : vector<1x32xf32> to vector<32x32xf32>
    %11 = arith.addf %8, %10 : vector<32x32xf32>
    %12 = arith.addf %11, %5 : vector<32x32xf32>
    %13 = arith.truncf %12 : vector<32x32xf32> to vector<32x32xbf16>
    %c768 = arith.constant 768 : index
    %c0_11 = arith.constant 0 : index
    %14 = vector.load %arg3[%c768, %c0_11] : memref<1328x128xbf16, #tpu.memory_space<vmem>>, vector<32x64xbf16>
    %cst_12 = arith.constant dense<0.000000e+00> : vector<32x64xf32>
    %15 = tpu.matmul %13, %14, %cst_12 {dimension_numbers = #tpu.dot_dimension_numbers<[1], [0], [0], [1], [0, 0, 1, 1], [], []>} : vector<32x32xbf16>, vector<32x64xbf16>, vector<32x64xf32> -> vector<32x64xf32>
    %c8_13 = arith.constant 8 : index
    %c0_14 = arith.constant 0 : index
    %16 = vector.load %arg4[%c8_13, %c0_14] : memref<240x128xf32, #tpu.memory_space<vmem>>, vector<1x64xf32>
    %17 = vector.broadcast %16 : vector<1x64xf32> to vector<32x64xf32>
    %18 = arith.addf %15, %17 : vector<32x64xf32>
    %19 = arith.mulf %18, %18 : vector<32x64xf32>
    %20 = arith.mulf %18, %19 : vector<32x64xf32>
    %cst_15 = arith.constant 4.471500e-02 : f32
    %21 = vector.broadcast %cst_15 : f32 to vector<32x64xf32>
    %22 = arith.mulf %21, %20 : vector<32x64xf32>
    %23 = arith.addf %18, %22 : vector<32x64xf32>
    %cst_16 = arith.constant 0.797884583 : f32
    %24 = vector.broadcast %cst_16 : f32 to vector<32x64xf32>
    %25 = arith.mulf %24, %23 : vector<32x64xf32>
    %26 = math.tanh %25 : vector<32x64xf32>
    %cst_17 = arith.constant 1.000000e+00 : f32
    %27 = vector.broadcast %cst_17 : f32 to vector<32x64xf32>
    %28 = arith.addf %27, %26 : vector<32x64xf32>
    %cst_18 = arith.constant 5.000000e-01 : f32
    %29 = vector.broadcast %cst_18 : f32 to vector<32x64xf32>
    %30 = arith.mulf %29, %28 : vector<32x64xf32>
    %31 = arith.mulf %18, %30 : vector<32x64xf32>
    %32 = arith.truncf %31 : vector<32x64xf32> to vector<32x64xbf16>
    %c800 = arith.constant 800 : index
    %c0_19 = arith.constant 0 : index
    %33 = vector.load %arg3[%c800, %c0_19] : memref<1328x128xbf16, #tpu.memory_space<vmem>>, vector<64x32xbf16>
    %cst_20 = arith.constant dense<0.000000e+00> : vector<32x32xf32>
    %34 = tpu.matmul %32, %33, %cst_20 {dimension_numbers = #tpu.dot_dimension_numbers<[1], [0], [0], [1], [0, 0, 1, 1], [], []>} : vector<32x64xbf16>, vector<64x32xbf16>, vector<32x32xf32> -> vector<32x32xf32>
    %35 = arith.addf %12, %34 : vector<32x32xf32>
    %c16_21 = arith.constant 16 : index
    %c0_22 = arith.constant 0 : index
    %36 = vector.load %arg4[%c16_21, %c0_22] : memref<240x128xf32, #tpu.memory_space<vmem>>, vector<1x32xf32>
    %37 = vector.broadcast %36 : vector<1x32xf32> to vector<32x32xf32>
    %38 = arith.addf %35, %37 : vector<32x32xf32>
    %39 = arith.truncf %38 : vector<32x32xf32> to vector<32x32xbf16>
    %c64 = arith.constant 64 : index
    %c0_23 = arith.constant 0 : index
    %40 = vector.load %arg4[%c64, %c0_23] : memref<240x128xf32, #tpu.memory_space<vmem>>, vector<1x32xf32>
    %41 = vector.extract_strided_slice %2 {offsets = [0, 0], sizes = [1, 32], strides = [1, 1]} : vector<2x32xf32> to vector<1x32xf32>
    %42 = arith.addf %40, %41 : vector<1x32xf32>
    %43 = vector.extract_strided_slice %0 {offsets = [0, 0], sizes = [2, 32], strides = [1, 1]} : vector<4x32xf32> to vector<2x32xf32>
    %44 = vector.extract_strided_slice %2 {offsets = [1, 0], sizes = [1, 32], strides = [1, 1]} : vector<2x32xf32> to vector<1x32xf32>
    %45 = arith.addf %40, %44 : vector<1x32xf32>
    %46 = vector.extract_strided_slice %0 {offsets = [2, 0], sizes = [2, 32], strides = [1, 1]} : vector<4x32xf32> to vector<2x32xf32>
    %47 = tpu.concatenate %42, %43, %45, %46 in 0 : vector<1x32xf32>, vector<2x32xf32>, vector<1x32xf32>, vector<2x32xf32> -> vector<6x32xf32>
    %c72 = arith.constant 72 : index
    %c0_24 = arith.constant 0 : index
    %48 = vector.load %arg4[%c72, %c0_24] : memref<240x128xf32, #tpu.memory_space<vmem>>, vector<32x32xf32>
    %49 = arith.addf %38, %48 : vector<32x32xf32>
    %50 = arith.truncf %47 : vector<6x32xf32> to vector<6x32xbf16>
    %51 = arith.truncf %49 : vector<32x32xf32> to vector<32x32xbf16>
    %cst_25 = arith.constant dense<0.000000e+00> : vector<6x32xf32>
    %52 = tpu.matmul %50, %51, %cst_25 {dimension_numbers = #tpu.dot_dimension_numbers<[1], [1], [0], [0], [0, 0, 1, 0], [], []>} : vector<6x32xbf16>, vector<32x32xbf16>, vector<6x32xf32> -> vector<6x32xf32>
    %cst_26 = arith.constant 0.176776692 : f32
    %53 = vector.broadcast %cst_26 : f32 to vector<6x32xf32>
    %54 = arith.mulf %52, %53 : vector<6x32xf32>
    %c104 = arith.constant 104 : index
    %c0_27 = arith.constant 0 : index
    %55 = vector.load %arg4[%c104, %c0_27] : memref<240x128xf32, #tpu.memory_space<vmem>>, vector<6x32xf32>
    %56 = arith.addf %54, %55 : vector<6x32xf32>
    %cst_28 = arith.constant dense<0xFF800000> : vector<6xf32>
    %57 = vector.multi_reduction <maximumf>, %56, %cst_28 [1] : vector<6x32xf32> to vector<6xf32>
    %58 = vector.shape_cast %57 : vector<6xf32> to vector<6x1xf32>
    %59 = vector.broadcast %58 : vector<6x1xf32> to vector<6x32xf32>
    %60 = arith.subf %56, %59 : vector<6x32xf32>
    %61 = math.exp %60 : vector<6x32xf32>
    %cst_29 = arith.constant dense<0.000000e+00> : vector<6xf32>
    %62 = vector.multi_reduction <add>, %61, %cst_29 [1] : vector<6x32xf32> to vector<6xf32>
    %63 = vector.shape_cast %62 : vector<6xf32> to vector<6x1xf32>
    %64 = tpu.reciprocal %63 {approx = true} : vector<6x1xf32> -> vector<6x1xf32>
    %65 = vector.broadcast %64 : vector<6x1xf32> to vector<6x32xf32>
    %66 = arith.mulf %61, %65 : vector<6x32xf32>
    %67 = arith.truncf %66 : vector<6x32xf32> to vector<6x32xbf16>
    %cst_30 = arith.constant dense<0.000000e+00> : vector<6x32xf32>
    %68 = tpu.matmul %67, %39, %cst_30 {dimension_numbers = #tpu.dot_dimension_numbers<[1], [0], [0], [1], [0, 0, 1, 1], [], []>} : vector<6x32xbf16>, vector<32x32xbf16>, vector<6x32xf32> -> vector<6x32xf32>
    %69 = arith.addf %47, %68 : vector<6x32xf32>
    %70 = arith.truncf %69 : vector<6x32xf32> to vector<6x32xbf16>
    %c864 = arith.constant 864 : index
    %c0_31 = arith.constant 0 : index
    %71 = vector.load %arg3[%c864, %c0_31] : memref<1328x128xbf16, #tpu.memory_space<vmem>>, vector<32x64xbf16>
    %cst_32 = arith.constant dense<0.000000e+00> : vector<6x64xf32>
    %72 = tpu.matmul %70, %71, %cst_32 {dimension_numbers = #tpu.dot_dimension_numbers<[1], [0], [0], [1], [0, 0, 1, 1], [], []>} : vector<6x32xbf16>, vector<32x64xbf16>, vector<6x64xf32> -> vector<6x64xf32>
    %c24 = arith.constant 24 : index
    %c0_33 = arith.constant 0 : index
    %73 = vector.load %arg4[%c24, %c0_33] : memref<240x128xf32, #tpu.memory_space<vmem>>, vector<1x64xf32>
    %74 = vector.broadcast %73 : vector<1x64xf32> to vector<6x64xf32>
    %75 = arith.addf %72, %74 : vector<6x64xf32>
    %76 = arith.mulf %75, %75 : vector<6x64xf32>
    %77 = arith.mulf %75, %76 : vector<6x64xf32>
    %cst_34 = arith.constant 4.471500e-02 : f32
    %78 = vector.broadcast %cst_34 : f32 to vector<6x64xf32>
    %79 = arith.mulf %78, %77 : vector<6x64xf32>
    %80 = arith.addf %75, %79 : vector<6x64xf32>
    %cst_35 = arith.constant 0.797884583 : f32
    %81 = vector.broadcast %cst_35 : f32 to vector<6x64xf32>
    %82 = arith.mulf %81, %80 : vector<6x64xf32>
    %83 = math.tanh %82 : vector<6x64xf32>
    %cst_36 = arith.constant 1.000000e+00 : f32
    %84 = vector.broadcast %cst_36 : f32 to vector<6x64xf32>
    %85 = arith.addf %84, %83 : vector<6x64xf32>
    %cst_37 = arith.constant 5.000000e-01 : f32
    %86 = vector.broadcast %cst_37 : f32 to vector<6x64xf32>
    %87 = arith.mulf %86, %85 : vector<6x64xf32>
    %88 = arith.mulf %75, %87 : vector<6x64xf32>
    %89 = arith.truncf %88 : vector<6x64xf32> to vector<6x64xbf16>
    %c896 = arith.constant 896 : index
    %c0_38 = arith.constant 0 : index
    %90 = vector.load %arg3[%c896, %c0_38] : memref<1328x128xbf16, #tpu.memory_space<vmem>>, vector<64x32xbf16>
    %cst_39 = arith.constant dense<0.000000e+00> : vector<6x32xf32>
    %91 = tpu.matmul %89, %90, %cst_39 {dimension_numbers = #tpu.dot_dimension_numbers<[1], [0], [0], [1], [0, 0, 1, 1], [], []>} : vector<6x64xbf16>, vector<64x32xbf16>, vector<6x32xf32> -> vector<6x32xf32>
    %92 = arith.addf %69, %91 : vector<6x32xf32>
    %c32 = arith.constant 32 : index
    %c0_40 = arith.constant 0 : index
    %93 = vector.load %arg4[%c32, %c0_40] : memref<240x128xf32, #tpu.memory_space<vmem>>, vector<1x32xf32>
    %94 = vector.broadcast %93 : vector<1x32xf32> to vector<6x32xf32>
    %95 = arith.addf %92, %94 : vector<6x32xf32>
    %96 = vector.extract_strided_slice %95 {offsets = [0, 0], sizes = [1, 32], strides = [1, 1]} : vector<6x32xf32> to vector<1x32xf32>
    %97 = vector.extract_strided_slice %95 {offsets = [3, 0], sizes = [1, 32], strides = [1, 1]} : vector<6x32xf32> to vector<1x32xf32>
    %98 = tpu.concatenate %96, %97 in 0 : vector<1x32xf32>, vector<1x32xf32> -> vector<2x32xf32>
    %99 = arith.truncf %98 : vector<2x32xf32> to vector<2x32xbf16>
    %c960 = arith.constant 960 : index
    %c0_41 = arith.constant 0 : index
    %100 = vector.load %arg3[%c960, %c0_41] : memref<1328x128xbf16, #tpu.memory_space<vmem>>, vector<32x64xbf16>
    %cst_42 = arith.constant dense<0.000000e+00> : vector<2x64xf32>
    %101 = tpu.matmul %99, %100, %cst_42 {dimension_numbers = #tpu.dot_dimension_numbers<[1], [0], [0], [1], [0, 0, 1, 1], [], []>} : vector<2x32xbf16>, vector<32x64xbf16>, vector<2x64xf32> -> vector<2x64xf32>
    %c40 = arith.constant 40 : index
    %c0_43 = arith.constant 0 : index
    %102 = vector.load %arg4[%c40, %c0_43] : memref<240x128xf32, #tpu.memory_space<vmem>>, vector<1x64xf32>
    %103 = vector.broadcast %102 : vector<1x64xf32> to vector<2x64xf32>
    %104 = arith.addf %101, %103 : vector<2x64xf32>
    %105 = arith.mulf %104, %104 : vector<2x64xf32>
    %106 = arith.mulf %104, %105 : vector<2x64xf32>
    %cst_44 = arith.constant 4.471500e-02 : f32
    %107 = vector.broadcast %cst_44 : f32 to vector<2x64xf32>
    %108 = arith.mulf %107, %106 : vector<2x64xf32>
    %109 = arith.addf %104, %108 : vector<2x64xf32>
    %cst_45 = arith.constant 0.797884583 : f32
    %110 = vector.broadcast %cst_45 : f32 to vector<2x64xf32>
    %111 = arith.mulf %110, %109 : vector<2x64xf32>
    %112 = math.tanh %111 : vector<2x64xf32>
    %cst_46 = arith.constant 1.000000e+00 : f32
    %113 = vector.broadcast %cst_46 : f32 to vector<2x64xf32>
    %114 = arith.addf %113, %112 : vector<2x64xf32>
    %cst_47 = arith.constant 5.000000e-01 : f32
    %115 = vector.broadcast %cst_47 : f32 to vector<2x64xf32>
    %116 = arith.mulf %115, %114 : vector<2x64xf32>
    %117 = arith.mulf %104, %116 : vector<2x64xf32>
    %118 = arith.truncf %117 : vector<2x64xf32> to vector<2x64xbf16>
    %c992 = arith.constant 992 : index
    %c0_48 = arith.constant 0 : index
    %119 = vector.load %arg3[%c992, %c0_48] : memref<1328x128xbf16, #tpu.memory_space<vmem>>, vector<64x8xbf16>
    %cst_49 = arith.constant dense<0.000000e+00> : vector<2x8xf32>
    %120 = tpu.matmul %118, %119, %cst_49 {dimension_numbers = #tpu.dot_dimension_numbers<[1], [0], [0], [1], [0, 0, 1, 1], [], []>} : vector<2x64xbf16>, vector<64x8xbf16>, vector<2x8xf32> -> vector<2x8xf32>
    %c48 = arith.constant 48 : index
    %c0_50 = arith.constant 0 : index
    %121 = vector.load %arg4[%c48, %c0_50] : memref<240x128xf32, #tpu.memory_space<vmem>>, vector<1x8xf32>
    %122 = vector.broadcast %121 : vector<1x8xf32> to vector<2x8xf32>
    %123 = arith.addf %120, %122 : vector<2x8xf32>
    %c1056 = arith.constant 1056 : index
    %c0_51 = arith.constant 0 : index
    %124 = vector.load %arg3[%c1056, %c0_51] : memref<1328x128xbf16, #tpu.memory_space<vmem>>, vector<32x128xbf16>
    %cst_52 = arith.constant dense<0.000000e+00> : vector<32x128xf32>
    %125 = tpu.matmul %39, %124, %cst_52 {dimension_numbers = #tpu.dot_dimension_numbers<[1], [0], [0], [1], [0, 0, 1, 1], [], []>} : vector<32x32xbf16>, vector<32x128xbf16>, vector<32x128xf32> -> vector<32x128xf32>
    %c56 = arith.constant 56 : index
    %c0_53 = arith.constant 0 : index
    %126 = vector.load %arg4[%c56, %c0_53] : memref<240x128xf32, #tpu.memory_space<vmem>>, vector<1x128xf32>
    %127 = vector.broadcast %126 : vector<1x128xf32> to vector<32x128xf32>
    %128 = arith.addf %125, %127 : vector<32x128xf32>
    %c1232_54 = arith.constant 1232 : index
    %c0_55 = arith.constant 0 : index
    %129 = vector.load %arg3[%c1232_54, %c0_55] : memref<1328x128xbf16, #tpu.memory_space<vmem>>, vector<32x2xbf16>
    %130 = arith.truncf %123 : vector<2x8xf32> to vector<2x8xbf16>
    %cst_56 = arith.constant dense<0.000000e+00> : vector<32x8xf32>
    %131 = tpu.matmul %129, %130, %cst_56 {dimension_numbers = #tpu.dot_dimension_numbers<[1], [0], [0], [1], [0, 0, 1, 1], [], []>} : vector<32x2xbf16>, vector<2x8xbf16>, vector<32x8xf32> -> vector<32x8xf32>
    %132 = arith.truncf %131 : vector<32x8xf32> to vector<32x8xbf16>
    %c1216 = arith.constant 1216 : index
    %c0_57 = arith.constant 0 : index
    %133 = vector.load %arg3[%c1216, %c0_57] : memref<1328x128xbf16, #tpu.memory_space<vmem>>, vector<8x128xbf16>
    %cst_58 = arith.constant dense<0.000000e+00> : vector<32x128xf32>
    %134 = tpu.matmul %132, %133, %cst_58 {dimension_numbers = #tpu.dot_dimension_numbers<[1], [0], [0], [1], [0, 0, 1, 1], [], []>} : vector<32x8xbf16>, vector<8x128xbf16>, vector<32x128xf32> -> vector<32x128xf32>
    %135 = arith.mulf %128, %134 : vector<32x128xf32>
    %136 = arith.truncf %135 : vector<32x128xf32> to vector<32x128xbf16>
    %c1088 = arith.constant 1088 : index
    %c0_59 = arith.constant 0 : index
    %137 = vector.load %arg3[%c1088, %c0_59] : memref<1328x128xbf16, #tpu.memory_space<vmem>>, vector<128x16xbf16>
    %cst_60 = arith.constant dense<0.000000e+00> : vector<32x16xf32>
    %138 = tpu.matmul %136, %137, %cst_60 {dimension_numbers = #tpu.dot_dimension_numbers<[1], [0], [0], [1], [0, 0, 1, 1], [], []>} : vector<32x128xbf16>, vector<128x16xbf16>, vector<32x16xf32> -> vector<32x16xf32>
    %c112 = arith.constant 112 : index
    %c0_61 = arith.constant 0 : index
    %139 = vector.load %arg4[%c112, %c0_61] : memref<240x128xf32, #tpu.memory_space<vmem>>, vector<128x128xf32>
    %140 = vector.extract_strided_slice %138 {offsets = [0, 0], sizes = [16, 1], strides = [1, 1]} : vector<32x16xf32> to vector<16x1xf32>
    %141 = vector.extract_strided_slice %139 {offsets = [0, 0], sizes = [16, 128], strides = [1, 1]} : vector<128x128xf32> to vector<16x128xf32>
    %142 = vector.broadcast %140 : vector<16x1xf32> to vector<16x128xf32>
    %143 = arith.mulf %142, %141 : vector<16x128xf32>
    %144 = vector.extract_strided_slice %138 {offsets = [0, 1], sizes = [16, 1], strides = [1, 1]} : vector<32x16xf32> to vector<16x1xf32>
    %145 = vector.extract_strided_slice %139 {offsets = [16, 0], sizes = [16, 128], strides = [1, 1]} : vector<128x128xf32> to vector<16x128xf32>
    %146 = vector.broadcast %144 : vector<16x1xf32> to vector<16x128xf32>
    %147 = arith.mulf %146, %145 : vector<16x128xf32>
    %148 = arith.addf %143, %147 : vector<16x128xf32>
    %149 = vector.extract_strided_slice %138 {offsets = [0, 2], sizes = [16, 1], strides = [1, 1]} : vector<32x16xf32> to vector<16x1xf32>
    %150 = vector.extract_strided_slice %139 {offsets = [32, 0], sizes = [16, 128], strides = [1, 1]} : vector<128x128xf32> to vector<16x128xf32>
    %151 = vector.broadcast %149 : vector<16x1xf32> to vector<16x128xf32>
    %152 = arith.mulf %151, %150 : vector<16x128xf32>
    %153 = arith.addf %148, %152 : vector<16x128xf32>
    %154 = vector.extract_strided_slice %138 {offsets = [0, 3], sizes = [16, 1], strides = [1, 1]} : vector<32x16xf32> to vector<16x1xf32>
    %155 = vector.extract_strided_slice %139 {offsets = [48, 0], sizes = [16, 128], strides = [1, 1]} : vector<128x128xf32> to vector<16x128xf32>
    %156 = vector.broadcast %154 : vector<16x1xf32> to vector<16x128xf32>
    %157 = arith.mulf %156, %155 : vector<16x128xf32>
    %158 = arith.addf %153, %157 : vector<16x128xf32>
    %159 = vector.extract_strided_slice %138 {offsets = [16, 0], sizes = [16, 1], strides = [1, 1]} : vector<32x16xf32> to vector<16x1xf32>
    %160 = vector.extract_strided_slice %139 {offsets = [64, 0], sizes = [16, 128], strides = [1, 1]} : vector<128x128xf32> to vector<16x128xf32>
    %161 = vector.broadcast %159 : vector<16x1xf32> to vector<16x128xf32>
    %162 = arith.mulf %161, %160 : vector<16x128xf32>
    %163 = arith.addf %158, %162 : vector<16x128xf32>
    %164 = vector.extract_strided_slice %138 {offsets = [16, 1], sizes = [16, 1], strides = [1, 1]} : vector<32x16xf32> to vector<16x1xf32>
    %165 = vector.extract_strided_slice %139 {offsets = [80, 0], sizes = [16, 128], strides = [1, 1]} : vector<128x128xf32> to vector<16x128xf32>
    %166 = vector.broadcast %164 : vector<16x1xf32> to vector<16x128xf32>
    %167 = arith.mulf %166, %165 : vector<16x128xf32>
    %168 = arith.addf %163, %167 : vector<16x128xf32>
    %169 = vector.extract_strided_slice %138 {offsets = [16, 2], sizes = [16, 1], strides = [1, 1]} : vector<32x16xf32> to vector<16x1xf32>
    %170 = vector.extract_strided_slice %139 {offsets = [96, 0], sizes = [16, 128], strides = [1, 1]} : vector<128x128xf32> to vector<16x128xf32>
    %171 = vector.broadcast %169 : vector<16x1xf32> to vector<16x128xf32>
    %172 = arith.mulf %171, %170 : vector<16x128xf32>
    %173 = arith.addf %168, %172 : vector<16x128xf32>
    %174 = vector.extract_strided_slice %138 {offsets = [16, 3], sizes = [16, 1], strides = [1, 1]} : vector<32x16xf32> to vector<16x1xf32>
    %175 = vector.extract_strided_slice %139 {offsets = [112, 0], sizes = [16, 128], strides = [1, 1]} : vector<128x128xf32> to vector<16x128xf32>
    %176 = vector.broadcast %174 : vector<16x1xf32> to vector<16x128xf32>
    %177 = arith.mulf %176, %175 : vector<16x128xf32>
    %178 = arith.addf %173, %177 : vector<16x128xf32>
    %179 = vector.extract_strided_slice %138 {offsets = [0, 4], sizes = [16, 1], strides = [1, 1]} : vector<32x16xf32> to vector<16x1xf32>
    %180 = vector.extract_strided_slice %139 {offsets = [0, 0], sizes = [16, 128], strides = [1, 1]} : vector<128x128xf32> to vector<16x128xf32>
    %181 = vector.broadcast %179 : vector<16x1xf32> to vector<16x128xf32>
    %182 = arith.mulf %181, %180 : vector<16x128xf32>
    %183 = vector.extract_strided_slice %138 {offsets = [0, 5], sizes = [16, 1], strides = [1, 1]} : vector<32x16xf32> to vector<16x1xf32>
    %184 = vector.extract_strided_slice %139 {offsets = [16, 0], sizes = [16, 128], strides = [1, 1]} : vector<128x128xf32> to vector<16x128xf32>
    %185 = vector.broadcast %183 : vector<16x1xf32> to vector<16x128xf32>
    %186 = arith.mulf %185, %184 : vector<16x128xf32>
    %187 = arith.addf %182, %186 : vector<16x128xf32>
    %188 = vector.extract_strided_slice %138 {offsets = [0, 6], sizes = [16, 1], strides = [1, 1]} : vector<32x16xf32> to vector<16x1xf32>
    %189 = vector.extract_strided_slice %139 {offsets = [32, 0], sizes = [16, 128], strides = [1, 1]} : vector<128x128xf32> to vector<16x128xf32>
    %190 = vector.broadcast %188 : vector<16x1xf32> to vector<16x128xf32>
    %191 = arith.mulf %190, %189 : vector<16x128xf32>
    %192 = arith.addf %187, %191 : vector<16x128xf32>
    %193 = vector.extract_strided_slice %138 {offsets = [0, 7], sizes = [16, 1], strides = [1, 1]} : vector<32x16xf32> to vector<16x1xf32>
    %194 = vector.extract_strided_slice %139 {offsets = [48, 0], sizes = [16, 128], strides = [1, 1]} : vector<128x128xf32> to vector<16x128xf32>
    %195 = vector.broadcast %193 : vector<16x1xf32> to vector<16x128xf32>
    %196 = arith.mulf %195, %194 : vector<16x128xf32>
    %197 = arith.addf %192, %196 : vector<16x128xf32>
    %198 = vector.extract_strided_slice %138 {offsets = [16, 4], sizes = [16, 1], strides = [1, 1]} : vector<32x16xf32> to vector<16x1xf32>
    %199 = vector.extract_strided_slice %139 {offsets = [64, 0], sizes = [16, 128], strides = [1, 1]} : vector<128x128xf32> to vector<16x128xf32>
    %200 = vector.broadcast %198 : vector<16x1xf32> to vector<16x128xf32>
    %201 = arith.mulf %200, %199 : vector<16x128xf32>
    %202 = arith.addf %197, %201 : vector<16x128xf32>
    %203 = vector.extract_strided_slice %138 {offsets = [16, 5], sizes = [16, 1], strides = [1, 1]} : vector<32x16xf32> to vector<16x1xf32>
    %204 = vector.extract_strided_slice %139 {offsets = [80, 0], sizes = [16, 128], strides = [1, 1]} : vector<128x128xf32> to vector<16x128xf32>
    %205 = vector.broadcast %203 : vector<16x1xf32> to vector<16x128xf32>
    %206 = arith.mulf %205, %204 : vector<16x128xf32>
    %207 = arith.addf %202, %206 : vector<16x128xf32>
    %208 = vector.extract_strided_slice %138 {offsets = [16, 6], sizes = [16, 1], strides = [1, 1]} : vector<32x16xf32> to vector<16x1xf32>
    %209 = vector.extract_strided_slice %139 {offsets = [96, 0], sizes = [16, 128], strides = [1, 1]} : vector<128x128xf32> to vector<16x128xf32>
    %210 = vector.broadcast %208 : vector<16x1xf32> to vector<16x128xf32>
    %211 = arith.mulf %210, %209 : vector<16x128xf32>
    %212 = arith.addf %207, %211 : vector<16x128xf32>
    %213 = vector.extract_strided_slice %138 {offsets = [16, 7], sizes = [16, 1], strides = [1, 1]} : vector<32x16xf32> to vector<16x1xf32>
    %214 = vector.extract_strided_slice %139 {offsets = [112, 0], sizes = [16, 128], strides = [1, 1]} : vector<128x128xf32> to vector<16x128xf32>
    %215 = vector.broadcast %213 : vector<16x1xf32> to vector<16x128xf32>
    %216 = arith.mulf %215, %214 : vector<16x128xf32>
    %217 = arith.addf %212, %216 : vector<16x128xf32>
    %218 = vector.extract_strided_slice %138 {offsets = [0, 8], sizes = [16, 1], strides = [1, 1]} : vector<32x16xf32> to vector<16x1xf32>
    %219 = vector.extract_strided_slice %139 {offsets = [0, 0], sizes = [16, 128], strides = [1, 1]} : vector<128x128xf32> to vector<16x128xf32>
    %220 = vector.broadcast %218 : vector<16x1xf32> to vector<16x128xf32>
    %221 = arith.mulf %220, %219 : vector<16x128xf32>
    %222 = vector.extract_strided_slice %138 {offsets = [0, 9], sizes = [16, 1], strides = [1, 1]} : vector<32x16xf32> to vector<16x1xf32>
    %223 = vector.extract_strided_slice %139 {offsets = [16, 0], sizes = [16, 128], strides = [1, 1]} : vector<128x128xf32> to vector<16x128xf32>
    %224 = vector.broadcast %222 : vector<16x1xf32> to vector<16x128xf32>
    %225 = arith.mulf %224, %223 : vector<16x128xf32>
    %226 = arith.addf %221, %225 : vector<16x128xf32>
    %227 = vector.extract_strided_slice %138 {offsets = [0, 10], sizes = [16, 1], strides = [1, 1]} : vector<32x16xf32> to vector<16x1xf32>
    %228 = vector.extract_strided_slice %139 {offsets = [32, 0], sizes = [16, 128], strides = [1, 1]} : vector<128x128xf32> to vector<16x128xf32>
    %229 = vector.broadcast %227 : vector<16x1xf32> to vector<16x128xf32>
    %230 = arith.mulf %229, %228 : vector<16x128xf32>
    %231 = arith.addf %226, %230 : vector<16x128xf32>
    %232 = vector.extract_strided_slice %138 {offsets = [0, 11], sizes = [16, 1], strides = [1, 1]} : vector<32x16xf32> to vector<16x1xf32>
    %233 = vector.extract_strided_slice %139 {offsets = [48, 0], sizes = [16, 128], strides = [1, 1]} : vector<128x128xf32> to vector<16x128xf32>
    %234 = vector.broadcast %232 : vector<16x1xf32> to vector<16x128xf32>
    %235 = arith.mulf %234, %233 : vector<16x128xf32>
    %236 = arith.addf %231, %235 : vector<16x128xf32>
    %237 = vector.extract_strided_slice %138 {offsets = [16, 8], sizes = [16, 1], strides = [1, 1]} : vector<32x16xf32> to vector<16x1xf32>
    %238 = vector.extract_strided_slice %139 {offsets = [64, 0], sizes = [16, 128], strides = [1, 1]} : vector<128x128xf32> to vector<16x128xf32>
    %239 = vector.broadcast %237 : vector<16x1xf32> to vector<16x128xf32>
    %240 = arith.mulf %239, %238 : vector<16x128xf32>
    %241 = arith.addf %236, %240 : vector<16x128xf32>
    %242 = vector.extract_strided_slice %138 {offsets = [16, 9], sizes = [16, 1], strides = [1, 1]} : vector<32x16xf32> to vector<16x1xf32>
    %243 = vector.extract_strided_slice %139 {offsets = [80, 0], sizes = [16, 128], strides = [1, 1]} : vector<128x128xf32> to vector<16x128xf32>
    %244 = vector.broadcast %242 : vector<16x1xf32> to vector<16x128xf32>
    %245 = arith.mulf %244, %243 : vector<16x128xf32>
    %246 = arith.addf %241, %245 : vector<16x128xf32>
    %247 = vector.extract_strided_slice %138 {offsets = [16, 10], sizes = [16, 1], strides = [1, 1]} : vector<32x16xf32> to vector<16x1xf32>
    %248 = vector.extract_strided_slice %139 {offsets = [96, 0], sizes = [16, 128], strides = [1, 1]} : vector<128x128xf32> to vector<16x128xf32>
    %249 = vector.broadcast %247 : vector<16x1xf32> to vector<16x128xf32>
    %250 = arith.mulf %249, %248 : vector<16x128xf32>
    %251 = arith.addf %246, %250 : vector<16x128xf32>
    %252 = vector.extract_strided_slice %138 {offsets = [16, 11], sizes = [16, 1], strides = [1, 1]} : vector<32x16xf32> to vector<16x1xf32>
    %253 = vector.extract_strided_slice %139 {offsets = [112, 0], sizes = [16, 128], strides = [1, 1]} : vector<128x128xf32> to vector<16x128xf32>
    %254 = vector.broadcast %252 : vector<16x1xf32> to vector<16x128xf32>
    %255 = arith.mulf %254, %253 : vector<16x128xf32>
    %256 = arith.addf %251, %255 : vector<16x128xf32>
    %257 = vector.extract_strided_slice %138 {offsets = [0, 12], sizes = [16, 1], strides = [1, 1]} : vector<32x16xf32> to vector<16x1xf32>
    %258 = vector.extract_strided_slice %139 {offsets = [0, 0], sizes = [16, 128], strides = [1, 1]} : vector<128x128xf32> to vector<16x128xf32>
    %259 = vector.broadcast %257 : vector<16x1xf32> to vector<16x128xf32>
    %260 = arith.mulf %259, %258 : vector<16x128xf32>
    %261 = vector.extract_strided_slice %138 {offsets = [0, 13], sizes = [16, 1], strides = [1, 1]} : vector<32x16xf32> to vector<16x1xf32>
    %262 = vector.extract_strided_slice %139 {offsets = [16, 0], sizes = [16, 128], strides = [1, 1]} : vector<128x128xf32> to vector<16x128xf32>
    %263 = vector.broadcast %261 : vector<16x1xf32> to vector<16x128xf32>
    %264 = arith.mulf %263, %262 : vector<16x128xf32>
    %265 = arith.addf %260, %264 : vector<16x128xf32>
    %266 = vector.extract_strided_slice %138 {offsets = [0, 14], sizes = [16, 1], strides = [1, 1]} : vector<32x16xf32> to vector<16x1xf32>
    %267 = vector.extract_strided_slice %139 {offsets = [32, 0], sizes = [16, 128], strides = [1, 1]} : vector<128x128xf32> to vector<16x128xf32>
    %268 = vector.broadcast %266 : vector<16x1xf32> to vector<16x128xf32>
    %269 = arith.mulf %268, %267 : vector<16x128xf32>
    %270 = arith.addf %265, %269 : vector<16x128xf32>
    %271 = vector.extract_strided_slice %138 {offsets = [0, 15], sizes = [16, 1], strides = [1, 1]} : vector<32x16xf32> to vector<16x1xf32>
    %272 = vector.extract_strided_slice %139 {offsets = [48, 0], sizes = [16, 128], strides = [1, 1]} : vector<128x128xf32> to vector<16x128xf32>
    %273 = vector.broadcast %271 : vector<16x1xf32> to vector<16x128xf32>
    %274 = arith.mulf %273, %272 : vector<16x128xf32>
    %275 = arith.addf %270, %274 : vector<16x128xf32>
    %276 = vector.extract_strided_slice %138 {offsets = [16, 12], sizes = [16, 1], strides = [1, 1]} : vector<32x16xf32> to vector<16x1xf32>
    %277 = vector.extract_strided_slice %139 {offsets = [64, 0], sizes = [16, 128], strides = [1, 1]} : vector<128x128xf32> to vector<16x128xf32>
    %278 = vector.broadcast %276 : vector<16x1xf32> to vector<16x128xf32>
    %279 = arith.mulf %278, %277 : vector<16x128xf32>
    %280 = arith.addf %275, %279 : vector<16x128xf32>
    %281 = vector.extract_strided_slice %138 {offsets = [16, 13], sizes = [16, 1], strides = [1, 1]} : vector<32x16xf32> to vector<16x1xf32>
    %282 = vector.extract_strided_slice %139 {offsets = [80, 0], sizes = [16, 128], strides = [1, 1]} : vector<128x128xf32> to vector<16x128xf32>
    %283 = vector.broadcast %281 : vector<16x1xf32> to vector<16x128xf32>
    %284 = arith.mulf %283, %282 : vector<16x128xf32>
    %285 = arith.addf %280, %284 : vector<16x128xf32>
    %286 = vector.extract_strided_slice %138 {offsets = [16, 14], sizes = [16, 1], strides = [1, 1]} : vector<32x16xf32> to vector<16x1xf32>
    %287 = vector.extract_strided_slice %139 {offsets = [96, 0], sizes = [16, 128], strides = [1, 1]} : vector<128x128xf32> to vector<16x128xf32>
    %288 = vector.broadcast %286 : vector<16x1xf32> to vector<16x128xf32>
    %289 = arith.mulf %288, %287 : vector<16x128xf32>
    %290 = arith.addf %285, %289 : vector<16x128xf32>
    %291 = vector.extract_strided_slice %138 {offsets = [16, 15], sizes = [16, 1], strides = [1, 1]} : vector<32x16xf32> to vector<16x1xf32>
    %292 = vector.extract_strided_slice %139 {offsets = [112, 0], sizes = [16, 128], strides = [1, 1]} : vector<128x128xf32> to vector<16x128xf32>
    %293 = vector.broadcast %291 : vector<16x1xf32> to vector<16x128xf32>
    %294 = arith.mulf %293, %292 : vector<16x128xf32>
    %295 = arith.addf %290, %294 : vector<16x128xf32>
    %296 = tpu.concatenate %178, %217, %256, %295 in 0 : vector<16x128xf32>, vector<16x128xf32>, vector<16x128xf32>, vector<16x128xf32> -> vector<64x128xf32>
    %c1264 = arith.constant 1264 : index
    %c0_62 = arith.constant 0 : index
    %297 = vector.load %arg3[%c1264, %c0_62] : memref<1328x128xbf16, #tpu.memory_space<vmem>>, vector<64x64xbf16>
    %298 = arith.truncf %296 : vector<64x128xf32> to vector<64x128xbf16>
    %cst_63 = arith.constant dense<0.000000e+00> : vector<64x128xf32>
    %299 = tpu.matmul %297, %298, %cst_63 {dimension_numbers = #tpu.dot_dimension_numbers<[1], [0], [0], [1], [0, 0, 1, 1], [], []>} : vector<64x64xbf16>, vector<64x128xbf16>, vector<64x128xf32> -> vector<64x128xf32>
    %c0_64 = arith.constant 0 : index
    %c0_65 = arith.constant 0 : index
    %300 = vector.load %arg5[%c0_64, %c0_65] : memref<64x128xf32, #tpu.memory_space<vmem>>, vector<64x128xf32>
    tpu.vector_store %arg5[%c0_64, %c0_65], %299 {strides = array<i32>} : memref<64x128xf32, #tpu.memory_space<vmem>>, vector<64x128xf32>,
    return
  }
  func.func @transform_0(%arg0: i32) -> (i32, i32) {
    %c0_i32 = arith.constant 0 : i32
    %c0_i32_0 = arith.constant 0 : i32
    %c0_i32_1 = arith.constant 0 : i32
    return %c0_i32, %c0_i32_0 : i32, i32
  }
  func.func @transform_1(%arg0: i32) -> (i32, i32) {
    %c0_i32 = arith.constant 0 : i32
    %c0_i32_0 = arith.constant 0 : i32
    %c0_i32_1 = arith.constant 0 : i32
    return %c0_i32, %c0_i32_0 : i32, i32
  }
  func.func @transform_2(%arg0: i32) -> (i32, i32) {
    %c0_i32 = arith.constant 0 : i32
    %c0_i32_0 = arith.constant 0 : i32
    %c0_i32_1 = arith.constant 0 : i32
    return %c0_i32, %c0_i32_0 : i32, i32
  }
  func.func @transform_3(%arg0: i32) -> (i32, i32) {
    %c0_i32 = arith.constant 0 : i32
    %c0_i32_0 = arith.constant 0 : i32
    %c0_i32_1 = arith.constant 0 : i32
    return %c0_i32, %c0_i32_0 : i32, i32
  }
  func.func @transform_4(%arg0: i32) -> (i32, i32) {
    %c0_i32 = arith.constant 0 : i32
    %c0_i32_0 = arith.constant 0 : i32
    %c0_i32_1 = arith.constant 0 : i32
    return %c0_i32, %c0_i32_0 : i32, i32
  }
}

</mosaic_0001>

<bundles_post_ra>
// kernel: medsam_forward.1
= control target key start
LH: loop header
LB: loop body
LE: loop exit
PB: predicated region body
PF: predicated region fallthrough
CT: control target
= control target key end

     0   :  { %vm43_vm0 = vcmask 1040384   ;;  %vm36_vm1 = vcmask 15360   ;;  %vm731_vm2 = vcmask 261120   ;;  %vm857_vm3 = vcmask 523264   ;;  %s3650_s1 = inlined_call_operand.vmem [shape: f32[24,32], index: 1, kind: input, shape index: {}]   ;;  %s3651_s2 = inlined_call_operand.vmem [shape: bf16[1328,128], index: 2, kind: input, shape index: {}]   ;;  %s3652_s0 = inlined_call_operand.vmem [shape: bf16[32,768], index: 0, kind: input, shape index: {}]   ;;  %s3653_s3 = inlined_call_operand.vmem [shape: f32[240,128], index: 3, kind: input, shape index: {}]   ;;  %s3654_s4 = inlined_call_operand.vmem [shape: f32[64,128], index: 4, kind: output, shape index: {}]  }
   0x1   :  { %v19_v0 = vld [vmem:[%s3650_s1 + $0x8] sm:$0x3]  ;;  %v2704_v2 = vld [vmem:[%s3651_s2 + $0x40] sm:$0xff]   ;;  %v2709_v8 = vld [vmem:[%s3651_s2 + $0x270] sm:$0xff]   ;;  %vm2823_vm4 = vmmov 0   ;;  %vm943_vm5 = vcmask 1042432  }
   0x2   :  { %v25_v1 = vpack.c.bf16 %v19_v0, %v19_v0  ;;  %2337 = vmatprep.subr.bf16.mxu1 %v2704_v2  ;;  %v2705_v4 = vld [vmem:[%s3651_s2] sm:$0xff]   ;;  %v2706_v5 = vld [vmem:[%s3651_s2 + $0x268] sm:$0xff]   ;;  %v2712_v11 = vld [vmem:[%s3651_s2 + $0x50] sm:$0xff]   ;;  %vm945_vm6 = vcmask 1043456   ;;  %vm1010_vm7 = vcmask 259072   ;;  %vm1515_vm8 = vcmask 64512  }
   0x3   :  { %2338 = vmatpush3.bf16.msra.mxu1 %v2705_v4  ;;  %v2707_v6 = vld [vmem:[%s3651_s2 + $0x48] sm:$0xff]   ;;  %2483 = vmatprep.mubr.msk.bf16.mxu0 %vm36_vm1, %v2706_v5  ;;  %v2708_v7 = vld [vmem:[%s3651_s2 + $0xc0] sm:$0xff]   ;;  %v2714_v13 = vld [vmem:[%s3651_s2 + $0x10] sm:$0xff]  }
   0x4   :  { %2619 = vmatprep.subr.msk.bf16.mxu0 %vm43_vm0, %v25_v1  ;;  %v45_v3 = vsel %vm43_vm0, %v25_v1, 0  ;;  %2339 = vmatprep.subr.bf16.mxu1 %v2707_v6  ;;  %v2710_v9 = vld [vmem:[%s3651_s2 + $0x8] sm:$0xff]   ;;  %v2711_v10 = vld [vmem:[%s3651_s2 + $0x80] sm:$0xff]   ;;  %v2716_v15 = vld [vmem:[%s3651_s2 + $0x58] sm:$0xff]  }
   0x5   :  { %2482 = vmatpush3.bf16.msra.mxu0 %v45_v3  ;;  %v2713_v12 = vld [vmem:[%s3651_s2 + $0xc8] sm:$0xff]   ;;  %v2717_v16 = vld [vmem:[%s3651_s2 + $0xd0] sm:$0xff]   ;;  %v2718_v17 = vld [vmem:[%s3651_s2 + $0x18] sm:$0xff]  }
   0x6   :  { %2365 = vmatprep.subr.bf16.mxu0 %v2708_v7  ;;  %v2715_v14 = vld [vmem:[%s3651_s2 + $0x88] sm:$0xff]   ;;  %v2719_v18 = vld [vmem:[%s3651_s2 + $0x90] sm:$0xff]   ;;  %v2720_v19 = vld [vmem:[%s3651_s2 + $0x60] sm:$0xff]  }
   0x7   :  { %2340 = vmatpush3.bf16.msra.mxu1 %v2710_v9  ;;  %v2721_v20 = vld [vmem:[%s3651_s2 + $0xd8] sm:$0xff]   ;;  %v2722_v21 = vld [vmem:[%s3651_s2 + $0x20] sm:$0xff]   ;;  %v2724_v23 = vld [vmem:[%s3651_s2 + $0x68] sm:$0xff]  }
   0x8   :  { %2484 = vmatmul.mubr.msk.bf16.vlgmr.msra.gmra.mrb[0].mxu0 %vm36_vm1, %v2709_v8  ;;  %2341 = vmatprep.subr.bf16.mxu1 %v2712_v11  ;;  %v2723_v22 = vld [vmem:[%s3651_s2 + $0x98] sm:$0xff]   ;;  %v2725_v24 = vld [vmem:[%s3651_s2 + $0xe0] sm:$0xff]   ;;  %v2726_v25 = vld [vmem:[%s3651_s2 + $0x28] sm:$0xff]  }
   0x9   :  { %2366 = vmatpush3.bf16.msra.mxu0 %v2711_v10  ;;  %v2727_v26 = vld [vmem:[%s3651_s2 + $0xa0] sm:$0xff]   ;;  %v2728_v27 = vld [vmem:[%s3651_s2 + $0x70] sm:$0xff]   ;;  %v2729_v28 = vld [vmem:[%s3651_s2 + $0xe8] sm:$0xff]  }
   0xa   :  { %2367 = vmatprep.subr.bf16.mxu0 %v2713_v12  ;;  %v2730_v29 = vld [vmem:[%s3651_s2 + $0x30] sm:$0xff]   ;;  %v2731_v30 = vld [vmem:[%s3651_s2 + $0xa8] sm:$0xff]   ;;  %v2732_v31 = vld [vmem:[%s3651_s2 + $0x78] sm:$0xff]  }
   0xb   :  { %2342 = vmatpush3.bf16.msra.mxu1 %v2714_v13  ;;  %v2733_v32 = vld [vmem:[%s3651_s2 + $0xf0] sm:$0xff]   ;;  %v2734_v33 = vld [vmem:[%s3651_s2 + $0x38] sm:$0xff]   ;;  %v2740_v38 = vld [vmem:[%s3651_s2 + $0x140] sm:$0xff]  }
   0xc   :  { %2343 = vmatprep.subr.bf16.mxu1 %v2716_v15  ;;  %v2735_v34 = vld [vmem:[%s3651_s2 + $0xb0] sm:$0xff]   ;;  %v2736_v35 = vld [vmem:[%s3652_s0] ss:$24 sps:$4 sm:$0xff]   ;;  %v2738_v36 = vld [vmem:[%s3652_s0 + $0x4] ss:$24 sps:$4 sm:$0xff]  }
   0xd   :  { %2368 = vmatpush3.bf16.msra.mxu0 %v2715_v14  ;;  %v2739_v37 = vld [vmem:[%s3651_s2 + $0xf8] sm:$0xff]   ;;  %589 = vmatprep.mubr.bf16.mxu1 %v2738_v36  ;;  %v2742_v40 = vld [vmem:[%s3651_s2 + $0x100] sm:$0xff]   ;;  %v2746_v43 = vld [vmem:[%s3651_s2 + $0x148] sm:$0xff]  }
   0xe   :  { %2369 = vmatprep.subr.bf16.mxu0 %v2717_v16  ;;  %v2741_v39 = vld [vmem:[%s3651_s2 + $0xb8] sm:$0xff]   ;;  %v2743_v41 = vld [vmem:[%s3652_s0 + $0x8] ss:$24 sps:$4 sm:$0xff]   ;;  %v2745_v42 = vld [vmem:[%s3652_s0 + $0xc] ss:$24 sps:$4 sm:$0xff]  }
   0xf   :  { %2344 = vmatpush3.bf16.msra.mxu1 %v2718_v17  ;;  %638 = vmatprep.mubr.bf16.mxu0 %v2745_v42  ;;  %v2747_v44 = vld [vmem:[%s3651_s2 + $0x108] sm:$0xff]   ;;  %v2748_v45 = vld [vmem:[%s3651_s2 + $0x150] sm:$0xff]   ;;  %v2750_v47 = vld [vmem:[%s3651_s2 + $0x158] sm:$0xff]  }
  0x10   :  { %2345 = vmatprep.subr.bf16.mxu1 %v2720_v19  ;;  %v2749_v46 = vld [vmem:[%s3651_s2 + $0x110] sm:$0xff]   ;;  %v2751_v48 = vld [vmem:[%s3651_s2 + $0x118] sm:$0xff]   ;;  %v2752_v49 = vld [vmem:[%s3651_s2 + $0x160] sm:$0xff]  }
  0x11   :  { %2370 = vmatpush3.bf16.msra.mxu0 %v2719_v18  ;;  %v2754_v50 = vld [vmem:[%s3652_s0 + $0x34] ss:$24 sps:$4 sm:$0xff]   ;;  %v2757_v51 = vld [vmem:[%s3652_s0 + $0x30] ss:$24 sps:$4 sm:$0xff]   ;;  %v2753_v52 = vld [vmem:[%s3651_s2 + $0x120] sm:$0xff]  }
  0x12   :  { %2371 = vmatprep.subr.bf16.mxu0 %v2721_v20  ;;  %v2759_v53 = vld [vmem:[%s3652_s0 + $0x3c] ss:$24 sps:$4 sm:$0xff]   ;;  %v2761_v54 = vld [vmem:[%s3652_s0 + $0x38] ss:$24 sps:$4 sm:$0xff]   ;;  %v2756_v55 = vld [vmem:[%s3651_s2 + $0x168] sm:$0xff]  }
  0x13   :  { %2346 = vmatpush3.bf16.msra.mxu1 %v2722_v21  ;;  %v2758_v56 = vld [vmem:[%s3651_s2 + $0x128] sm:$0xff]   ;;  %v2762_v57 = vld [vmem:[%s3651_s2 + $0x170] sm:$0xff]   ;;  %v2764_v60 = vld [vmem:[%s3651_s2 + $0x178] sm:$0xff]  }
  0x14   :  { %2347 = vmatprep.subr.bf16.mxu1 %v2724_v23  ;;  %v2768_v58 = vld [vmem:[%s3652_s0 + $0x14] ss:$24 sps:$4 sm:$0xff]   ;;  %v2765_v61 = vld [vmem:[%s3651_s2 + $0x138] sm:$0xff]   ;;  %v2766_v62 = vld [vmem:[%s3652_s0 + $0x10] ss:$24 sps:$4 sm:$0xff]  }
  0x15   :  { %2372 = vmatpush3.bf16.msra.mxu0 %v2723_v22  ;;  %v2763_v59 = vld [vmem:[%s3651_s2 + $0x130] sm:$0xff]   ;;  %v2769_v63 = vld [vmem:[%s3652_s0 + $0x44] ss:$24 sps:$4 sm:$0xff]   ;;  %v2771_v0 = vld [vmem:[%s3652_s0 + $0x40] ss:$24 sps:$4 sm:$0xff]  }
  0x16   :  { %2373 = vmatprep.subr.bf16.mxu0 %v2725_v24  ;;  %v2772_v1 = vld [vmem:[%s3651_s2 + $0x180] sm:$0xff]   ;;  %v2773_v2 = vld [vmem:[%s3651_s2 + $0x188] sm:$0xff]  }
  0x17   :  { %2348 = vmatpush3.bf16.msra.mxu1 %v2726_v25  ;;  %v2214_v13 = vld [vmem:[%s3653_s3] ss:$0 sm:$0xff] }
  0x18   :  { %2349 = vmatprep.subr.bf16.mxu1 %v2728_v27 }
  0x19   :  { %2374 = vmatpush3.bf16.msra.mxu0 %v2727_v26 }
  0x1a   :  { %2375 = vmatprep.subr.bf16.mxu0 %v2729_v28 }
  0x1b   :  { %2350 = vmatpush3.bf16.msra.mxu1 %v2730_v29 }
  0x1c   :  { %2351 = vmatprep.subr.bf16.mxu1 %v2732_v31 }
  0x1d   :  { %2376 = vmatpush3.bf16.msra.mxu0 %v2731_v30 }
  0x1e   :  { %2377 = vmatprep.subr.bf16.mxu0 %v2733_v32 }
  0x1f   :  { %2352 = vmatpush3.bf16.msra.mxu1 %v2734_v33 }
  0x20   :  { %2393 = vmatprep.subr.bf16.mxu1 %v2740_v38 }
  0x21   :  { %2378 = vmatpush3.bf16.msra.mxu0 %v2735_v34 }
  0x22   :  { %590 = vmatmul.mubr.bf16.vlgmr.msra.gmra.mrb[0].mxu1 %v2736_v35  ;;  %2379 = vmatprep.subr.bf16.mxu0 %v2739_v37 }
  0x23   :  { %2394 = vmatpush3.bf16.msra.mxu1 %v2742_v40  ;;  %597 = vmatprep.mubr.bf16.mxu1 %v2754_v50 }
  0x24   :  { %2395 = vmatprep.subr.bf16.mxu1 %v2746_v43 }
  0x25   :  { %2380 = vmatpush3.bf16.msra.mxu0 %v2741_v39 }
  0x26   :  { %2487 = vmatprep.subr.bf16.mxu0 %v2772_v1 }
  0x27   :  { %2396 = vmatpush3.bf16.msra.mxu1 %v2747_v44 }
  0x28   :  { %639 = vmatmul.mubr.bf16.vlgmr.msra.gmra.mrb[4].mxu0 %v2743_v41  ;;  %2397 = vmatprep.subr.bf16.mxu1 %v2748_v45 }
  0x29   :  { %646 = vmatprep.mubr.bf16.mxu0 %v2759_v53  ;;  %2488 = vmatpush3.bf16.msra.mxu0 %v2772_v1  ;;  %v2777_v1 = vld [vmem:[%s3651_s2 + $0x1a8] sm:$0xff]  }
  0x2a   :  { %598 = vmatmul.mubr.bf16.gmra.mrb[4].mxu1 %v2757_v51  ;;  %2489 = vmatprep.subr.bf16.mxu0 %v2773_v2 }
  0x2b   :  { %2398 = vmatpush3.bf16.msra.mxu1 %v2749_v46  ;;  %687 = vmatprep.mubr.bf16.mxu1 %v2768_v58 }
  0x2c   :  { %2399 = vmatprep.subr.bf16.mxu1 %v2750_v47 }
  0x2d   :  { %2490 = vmatpush3.bf16.msra.mxu0 %v2773_v2  ;;  %v2275_v2 = vld [vmem:[%s3653_s3 + $0x8] ss:$0 sm:$0xff] }
  0x2f   :  { %2400 = vmatpush3.bf16.msra.mxu1 %v2751_v48 }
  0x30   :  { %2401 = vmatprep.subr.bf16.mxu1 %v2752_v49  ;;  %647 = vmatmul.mubr.bf16.gmra.mrb[8].mxu0 %v2761_v54 }
  0x33   :  { %2402 = vmatpush3.bf16.msra.mxu1 %v2753_v52 }
  0x34   :  { %2403 = vmatprep.subr.bf16.mxu1 %v2756_v55 }
  0x37   :  { %2404 = vmatpush3.bf16.msra.mxu1 %v2758_v56 }
  0x38   :  { %2405 = vmatprep.subr.bf16.mxu1 %v2762_v57 }
  0x3b   :  { %2406 = vmatpush3.bf16.msra.mxu1 %v2763_v59 }
  0x3c   :  { %2407 = vmatprep.subr.bf16.mxu1 %v2764_v60 }
  0x3f   :  { %2408 = vmatpush3.bf16.msra.mxu1 %v2765_v61 }
  0x42   :  { %688 = vmatmul.mubr.bf16.vlgmr.msra.gmra.mrb[8].mxu1 %v2766_v62  ;;  %v2774_v62 = vld [vmem:[%s3651_s2 + $0x190] sm:$0xff]  }
  0x43   :  { %695 = vmatprep.mubr.bf16.mxu1 %v2769_v63  ;;  %2495 = vmatprep.subr.bf16.mxu0 %v2774_v62  ;;  %v2775_v63 = vld [vmem:[%s3651_s2 + $0x198] sm:$0xff]  }
  0x4a   :  { %696 = vmatmul.mubr.bf16.gmra.mrb[12].mxu1 %v2771_v0  ;;  %v2776_v0 = vld [vmem:[%s3651_s2 + $0x1a0] sm:$0xff]  }
  0xdb   :  { %v2485_v3 = vpop.f32.mrb[0].mxu0 }
  0xdc   :  { %v81_v4 = vpop.f32.mrb[1].mxu0 }
  0xdd   :  { %v2486_v5 = vpop.f32.mrb[2].mxu0 }
  0xde   :  { %v84_v6 = vpop.f32.mrb[3].mxu0 }
  0xf5   :  { %v2353_v7 = vpop.f32.mrb[0].mxu1 }
  0xf6   :  { %v2354_v8 = vpop.f32.mrb[1].mxu1 }
  0xf7   :  { %v2355_v9 = vadd.f32 %v2354_v8, %v2353_v7  ;;  %v2356_v10 = vpop.f32.mrb[2].mxu1 }
  0xf8   :  { %v2357_v11 = vpop.f32.mrb[3].mxu1 }
  0xf9   :  { %v2358_v12 = vadd.f32 %v2357_v11, %v2356_v10  ;;  %v592_v16 = vadd.f32 %v2355_v9, %v2214_v13 }
  0xfb   :  { %v2381_v14 = vpop.f32.mrb[4].mxu0  ;;  %v595_v20 = vadd.f32 %v2358_v12, %v2214_v13 }
  0xfc   :  { %v2382_v15 = vpop.f32.mrb[5].mxu0 }
  0xfd   :  { %v2383_v17 = vadd.f32 %v2382_v15, %v2381_v14  ;;  %v2384_v18 = vpop.f32.mrb[6].mxu0  ;;  %v2359_v24 = vpop.f32.mrb[4].mxu1 }
  0xfe   :  { %v2385_v19 = vpop.f32.mrb[7].mxu0  ;;  %v2360_v25 = vpop.f32.mrb[5].mxu1 }
  0xff   :  { %v641_v21 = vadd.f32 %v2383_v17, %v592_v16  ;;  %v2386_v22 = vadd.f32 %v2385_v19, %v2384_v18  ;;  %v2361_v26 = vadd.f32 %v2360_v25, %v2359_v24  ;;  %v2362_v27 = vpop.f32.mrb[6].mxu1 }
 0x100   :  { %v2363_v29 = vpop.f32.mrb[7].mxu1 }
 0x101   :  { %v644_v23 = vadd.f32 %v2386_v22, %v595_v20  ;;  %v600_v31 = vadd.f32 %v2361_v26, %v2214_v13  ;;  %v2364_v32 = vadd.f32 %v2363_v29, %v2362_v27 }
 0x103   :  { %v2387_v28 = vpop.f32.mrb[8].mxu0  ;;  %v603_v36 = vadd.f32 %v2364_v32, %v2214_v13 }
 0x104   :  { %v2388_v30 = vpop.f32.mrb[9].mxu0 }
 0x105   :  { %v2389_v33 = vadd.f32 %v2388_v30, %v2387_v28  ;;  %v2390_v34 = vpop.f32.mrb[10].mxu0 }
 0x106   :  { %v2391_v35 = vpop.f32.mrb[11].mxu0 }
 0x107   :  { %v649_v37 = vadd.f32 %v2389_v33, %v600_v31  ;;  %v2392_v38 = vadd.f32 %v2391_v35, %v2390_v34 }
 0x109   :  { %v652_v39 = vadd.f32 %v2392_v38, %v603_v36 }
 0x115   :  { %v2409_v40 = vpop.f32.mrb[8].mxu1 }
 0x116   :  { %v2410_v41 = vpop.f32.mrb[9].mxu1 }
 0x117   :  { %v2411_v42 = vadd.f32 %v2410_v41, %v2409_v40  ;;  %v2412_v43 = vpop.f32.mrb[10].mxu1 }
 0x118   :  { %v2413_v44 = vpop.f32.mrb[11].mxu1 }
 0x119   :  { %v690_v45 = vadd.f32 %v2411_v42, %v641_v21  ;;  %v2414_v46 = vadd.f32 %v2413_v44, %v2412_v43 }
 0x11b   :  { %v3067_v47 = vadd.f32 %v690_v45, %v81_v4  ;;  %v693_v48 = vadd.f32 %v2414_v46, %v644_v23 }
 0x11d   :  { %v3069_v49 = vadd.f32 %v693_v48, %v84_v6  ;;  %v2415_v50 = vpop.f32.mrb[12].mxu1 }
 0x11e   :  { %v2416_v51 = vpop.f32.mrb[13].mxu1 }
 0x11f   :  { %v708_v52 = vpack.c.bf16 %v3069_v49, %v3067_v47  ;;  %v2417_v53 = vadd.f32 %v2416_v51, %v2415_v50  ;;  %v2418_v54 = vpop.f32.mrb[14].mxu1  ;;  %v2822_v51 = vmov 0.0  }
 0x120   :  { %v2419_v55 = vpop.f32.mrb[15].mxu1  ;;  %2507 = vmatprep.subr.bf16.mxu1 %v2822_v51  ;;  %2511 = vmatprep.mubr.msk.bf16.mxu1 %vm2823_vm4, %v2822_v51 }
 0x121   :  { %v698_v56 = vadd.f32 %v2417_v53, %v649_v37  ;;  %v2420_v57 = vadd.f32 %v2419_v55, %v2418_v54  ;;  %2491 = vmatprep.mubr.msk.bf16.mxu0 %vm731_vm2, %v708_v52  ;;  %v2286_v53 = vld [vmem:[%s3653_s3 + $0x10] ss:$0 sm:$0xff] }
 0x123   :  { %v3074_v58 = vadd.f32 %v2485_v3, %v698_v56  ;;  %v701_v59 = vadd.f32 %v2420_v57, %v652_v39 }
 0x125   :  { %v3076_v60 = vadd.f32 %v2486_v5, %v701_v59  ;;  %v20_v59 = vld [vmem:[%s3650_s1 + $0x10] sm:$0x3] }
 0x127   :  { %v709_v61 = vpack.c.bf16 %v3076_v60, %v3074_v58 }
 0x129   :  { %2492 = vmatmul.mubr.msk.bf16.vlgmr.msra.gmra.mrb[12].mxu0 %vm731_vm2, %v709_v61 }
 0x12a   :  { %2496 = vmatpush3.bf16.msra.mxu0 %v2774_v62 }
 0x12b   :  { %2497 = vmatprep.subr.bf16.mxu0 %v2775_v63 }
 0x12e   :  { %2498 = vmatpush3.bf16.msra.mxu0 %v2775_v63 }
 0x12f   :  { %2499 = vmatprep.subr.bf16.mxu0 %v2776_v0 }
 0x132   :  { %2500 = vmatpush3.bf16.msra.mxu0 %v2776_v0  ;;  %v949_v0 = vld [vmem:[%s3653_s3 + $0x58] sm:$0xff] }
 0x133   :  { %2501 = vmatprep.subr.bf16.mxu0 %v2777_v1 }
 0x136   :  { %2502 = vmatpush3.bf16.msra.mxu0 %v2777_v1 }
 0x137   :  { %2515 = vmatprep.subr.bf16.mxu0 %v2822_v51 }
 0x1fc   :  { %v2493_v3 = vpop.f32.mrb[12].mxu0 }
 0x1fd   :  { %v781_v4 = vadd.f32 %v2493_v3, %v2275_v2  ;;  %v772_v5 = vpop.f32.mrb[13].mxu0 }
 0x1fe   :  { %v773_v6 = vadd.f32 %v2275_v2, %v772_v5  ;;  %v2494_v7 = vpop.f32.mrb[14].mxu0 }
 0x1ff   :  { %v789_v8 = vmul.f32 %v781_v4, %v781_v4  ;;  %v784_v9 = vadd.f32 %v2494_v7, %v2275_v2  ;;  %v775_v10 = vpop.f32.mrb[15].mxu0 }
 0x200   :  { %v787_v11 = vmul.f32 %v773_v6, %v773_v6  ;;  %v776_v12 = vadd.f32 %v2275_v2, %v775_v10  ;;  %v947_v2 = vld [vmem:[%s3653_s3 + $0x48] sm:$0xff] }
 0x201   :  { %v793_v13 = vmul.f32 %v789_v8, %v781_v4  ;;  %v790_v14 = vmul.f32 %v784_v9, %v784_v9 }
 0x202   :  { %v791_v15 = vmul.f32 %v787_v11, %v773_v6  ;;  %v788_v16 = vmul.f32 %v776_v12, %v776_v12 }
 0x203   :  { %v797_v17 = vmul.f32 0.044715, %v793_v13  ;;  %v794_v18 = vmul.f32 %v790_v14, %v784_v9 }
 0x204   :  { %v795_v19 = vmul.f32 0.044715, %v791_v15  ;;  %v792_v20 = vmul.f32 %v788_v16, %v776_v12 }
 0x205   :  { %v801_v21 = vadd.f32 %v797_v17, %v781_v4  ;;  %v798_v22 = vmul.f32 0.044715, %v794_v18 }
 0x206   :  { %v799_v23 = vadd.f32 %v795_v19, %v773_v6  ;;  %v796_v24 = vmul.f32 0.044715, %v792_v20 }
 0x207   :  { %v805_v25 = vmul.f32 0.7978846, %v801_v21  ;;  %v802_v26 = vadd.f32 %v798_v22, %v784_v9 }
 0x208   :  { %v803_v27 = vmul.f32 0.7978846, %v799_v23  ;;  %v800_v28 = vadd.f32 %v796_v24, %v776_v12 }
 0x209   :  { %2804 = vtanh.f32 %v805_v25  ;;  %v806_v29 = vmul.f32 0.7978846, %v802_v26 }
 0x20a   :  { %2806 = vtanh.f32 %v803_v27  ;;  %v804_v30 = vmul.f32 0.7978846, %v800_v28  ;;  %v1008_v27 = vld [vmem:[%s3653_s3 + $0x68] sm:$0x3f] }
 0x20b   :  { %2808 = vtanh.f32 %v806_v29 }
 0x20c   :  { %2810 = vtanh.f32 %v804_v30 }
 0x213   :  { %v2805_v31 = vpop.eup %2804 }
 0x214   :  { %v2807_v32 = vpop.eup %2806  ;;  %v813_v33 = vadd.f32 1.0, %v2805_v31 }
 0x215   :  { %v2809_v34 = vpop.eup %2808  ;;  %v811_v35 = vadd.f32 1.0, %v2807_v32 }
 0x216   :  { %v2811_v36 = vpop.eup %2810  ;;  %v817_v37 = vmul.f32 0.5, %v813_v33  ;;  %v814_v38 = vadd.f32 1.0, %v2809_v34 }
 0x217   :  { %v815_v39 = vmul.f32 0.5, %v811_v35  ;;  %v812_v40 = vadd.f32 1.0, %v2811_v36 }
 0x218   :  { %v818_v41 = vmul.f32 0.5, %v814_v38  ;;  %v821_v43 = vmul.f32 %v817_v37, %v781_v4  ;;  %v931_v4 = vrot.slane %v20_v59, 1 }
 0x219   :  { %v816_v42 = vmul.f32 0.5, %v812_v40  ;;  %v819_v45 = vmul.f32 %v815_v39, %v773_v6  ;;  %v928_v6 = vld [vmem:[%s3653_s3 + $0x40] sm:$0x1] }
 0x21a   :  { %v822_v44 = vmul.f32 %v818_v41, %v784_v9  ;;  %v933_v14 = vadd.f32 %v931_v4, %v928_v6  ;;  %v929_v16 = vadd.f32 %v928_v6, %v20_v59  ;;  %v2784_v59 = vld [vmem:[%s3651_s2 + $0x210] sm:$0xff]  }
 0x21b   :  { %v820_v46 = vmul.f32 %v816_v42, %v776_v12  ;;  %v2778_v42 = vld [vmem:[%s3651_s2 + $0x1b0] sm:$0xff]  }
 0x21c   :  { %v824_v48 = vpack.c.bf16 %v822_v44, %v821_v43  ;;  %v938_v19 = vrot.slane %v933_v14, 5  ;;  %v2779_v44 = vld [vmem:[%s3651_s2 + $0x1b8] sm:$0xff]   ;;  %v2298_v14 = vld [vmem:[%s3653_s3 + $0x20] ss:$0 sm:$0xff] }
 0x21d   :  { %v823_v50 = vpack.c.bf16 %v820_v46, %v819_v45 }
 0x21f   :  { %2503 = vmatprep.mubr.msk.bf16.mxu0 %vm857_vm3, %v823_v50 }
 0x220   :  { %2504 = vmatmul.mubr.msk.bf16.vlgmr.msra.gmra.mrb[16].mxu0 %vm857_vm3, %v824_v48 }
 0x221   :  { %2519 = vmatprep.mubr.msk.bf16.mxu0 %vm2823_vm4, %v2822_v51 }
 0x2f3   :  { %v2505_v52 = vpop.f32.mrb[16].mxu0 }
 0x2f4   :  { %v915_v54 = vadd.f32 %v2505_v52, %v3074_v58  ;;  %v898_v55 = vpop.f32.mrb[17].mxu0  ;;  %v950_v58 = vld [vmem:[%s3653_s3 + $0x60] sm:$0xff] }
 0x2f5   :  { %v913_v56 = vadd.f32 %v898_v55, %v3067_v47  ;;  %v2506_v57 = vpop.f32.mrb[18].mxu0  ;;  %v2781_v55 = vld [vmem:[%s3651_s2 + $0x1c8] sm:$0xff]  }
 0x2f6   :  { %v924_v61 = vadd.f32 %v2286_v53, %v915_v54  ;;  %v916_v62 = vadd.f32 %v2506_v57, %v3076_v60  ;;  %v901_v63 = vpop.f32.mrb[19].mxu0  ;;  %v948_v60 = vld [vmem:[%s3653_s3 + $0x50] sm:$0xff]  ;;  %v2780_v54 = vld [vmem:[%s3651_s2 + $0x1c0] sm:$0xff]   ;;  %v2783_v57 = vld [vmem:[%s3651_s2 + $0x1d8] sm:$0xff]  }
 0x2f7   :  { %v922_v1 = vadd.f32 %v2286_v53, %v913_v56  ;;  %v914_v47 = vadd.f32 %v901_v63, %v3069_v49  ;;  %v18_v49 = vld [vmem:[%s3650_s1] sm:$0xf]  ;;  %v2782_v56 = vld [vmem:[%s3651_s2 + $0x1d0] sm:$0xff]  }
 0x2f8   :  { %v925_v3 = vadd.f32 %v2286_v53, %v916_v62  ;;  %v953_v7 = vadd.f32 %v949_v0, %v924_v61  ;;  %v935_v17 = vrot.slane %v18_v49, 7  ;;  %v940_v21 = vrot.slane %v18_v49, 6 }
 0x2f9   :  { %v923_v5 = vadd.f32 %v2286_v53, %v914_v47  ;;  %v951_v10 = vadd.f32 %v947_v2, %v922_v1 }
 0x2fa   :  { %v3129_v8 = vpack.c.bf16 %v925_v3, %v924_v61  ;;  %v954_v9 = vadd.f32 %v950_v58, %v925_v3  ;;  %v942_v20 = vsel %vm43_vm0, %v929_v16, %v935_v17  ;;  %v2289_v61 = vld [vmem:[%s3653_s3 + $0x18] ss:$0 sm:$0xff] }
 0x2fb   :  { %v3134_v11 = vpack.c.bf16 %v923_v5, %v922_v1  ;;  %v952_v12 = vadd.f32 %v948_v60, %v923_v5  ;;  %v944_v22 = vsel %vm943_vm5, %v942_v20, %v938_v19 }
 0x2fc   :  { %v957_v13 = vpack.c.bf16 %v954_v9, %v953_v7  ;;  %v946_v24 = vsel %vm945_vm6, %v944_v22, %v940_v21 }
 0x2fd   :  { %2516 = vmatpush3.bf16.msra.mxu0 %v3134_v11  ;;  %v956_v15 = vpack.c.bf16 %v952_v12, %v951_v10  ;;  %v955_v25 = vpack.c.bf16 %v946_v24, %v946_v24  ;;  %v2785_v10 = vld [vmem:[%s3651_s2 + $0x218] sm:$0xff]   ;;  %v2820_v12 = vld [vmem:[%s3651_s2 + $0x268] sm:$0xff]  }
 0x2fe   :  { %2517 = vmatprep.subr.bf16.mxu0 %v2822_v51  ;;  %v965_v23 = vsel %vm731_vm2, %v957_v13, 0  ;;  %v2786_v13 = vld [vmem:[%s3651_s2 + $0x1e0] sm:$0xff]  }
 0x2ff   :  { %v962_v18 = vsel %vm731_vm2, %v956_v15, 0 }
 0x300   :  { %2508 = vmatpush3.bf16.xpose.msra.mxu1 %v962_v18 }
 0x301   :  { %2518 = vmatpush3.bf16.msra.mxu0 %v3129_v8  ;;  %2509 = vmatprep.subr.bf16.mxu1 %v2822_v51 }
 0x302   :  { %2523 = vmatprep.subr.bf16.mxu0 %v2822_v51 }
 0x308   :  { %2510 = vmatpush3.bf16.xpose.msra.mxu1 %v965_v23 }
 0x309   :  { %2531 = vmatprep.subr.bf16.mxu1 %v2822_v51 }
 0x30f   :  { %2512 = vmatmul.mubr.msk.bf16.vlgmr.msra.gmra.mrb[16].mxu1 %vm731_vm2, %v955_v25 }
 0x310   :  { %2539 = vmatprep.mubr.msk.bf16.mxu1 %vm2823_vm4, %v2822_v51  ;;  %2532 = vmatpush3.bf16.msra.mxu1 %v2780_v54 }
 0x311   :  { %2533 = vmatprep.subr.bf16.mxu1 %v2822_v51 }
 0x314   :  { %2534 = vmatpush3.bf16.msra.mxu1 %v2781_v55 }
 0x315   :  { %2535 = vmatprep.subr.bf16.mxu1 %v2822_v51 }
 0x318   :  { %2536 = vmatpush3.bf16.msra.mxu1 %v2782_v56 }
 0x319   :  { %2537 = vmatprep.subr.bf16.mxu1 %v2822_v51 }
 0x31c   :  { %2538 = vmatpush3.bf16.msra.mxu1 %v2783_v57  ;;  %v2821_v57 = vld [vmem:[%s3651_s2 + $0x270] sm:$0xff]  }
 0x31d   :  { %2563 = vmatprep.subr.bf16.mxu1 %v2784_v59 }
 0x3e2   :  { %v1001_v26 = vpop.f32.mrb[16].mxu1 }
 0x3e3   :  { %v1007_v28 = vmul.f32 0.17677669, %v1001_v26  ;;  %v2513_v29 = vpop.f32.mrb[17].mxu1 }
 0x3e4   :  { %v1004_v30 = vpop.f32.mrb[18].mxu1  ;;  %v2790_v29 = vld [vmem:[%s3651_s2 + $0x200] sm:$0xff]  }
 0x3e5   :  { %v2514_v31 = vpop.f32.mrb[19].mxu1  ;;  %v1009_v32 = vadd.f32 %v1008_v27, %v1007_v28  ;;  %v2788_v27 = vld [vmem:[%s3651_s2 + $0x1f0] sm:$0xff]   ;;  %v2789_v28 = vld [vmem:[%s3651_s2 + $0x1f8] sm:$0xff]   ;;  %v2791_v30 = vld [vmem:[%s3651_s2 + $0x208] sm:$0xff]  }
 0x3e6   :  { %v2299_v31 = vld [vmem:[%s3653_s3 + $0x28] ss:$0 sm:$0xff] }
 0x3e7   :  { %v1011_v33 = vsel %vm1010_vm7, %v1009_v32, -inf }
 0x3e8   :  { %1012 = vmax.xlane.f32.xlu0 %v1011_v33 }
 0x475   :  { %v1013_v34 = vpop.xlane.xlu0 %1012 }
 0x476   :  { %v1014_v35 = vsub.f32 %v1009_v32, %v1013_v34 }
 0x478   :  { %v1015_v36 = vmul.f32 1.442695, %v1014_v35 }
 0x47a   :  { %2812 = vpow2.f32 %v1015_v36 }
 0x484   :  { %v2813_v37 = vpop.eup %2812 }
 0x485   :  { %v1017_v38 = vsel %vm1010_vm7, %v2813_v37, 0.0 }
 0x486   :  { %1018 = vadd.xlane.f32.xlu0 %v1017_v38 }
 0x513   :  { %v1019_v39 = vpop.xlane.xlu0 %1018 }
 0x514   :  { %2814 = vrcp.f32 %v1019_v39 }
 0x51e   :  { %v2815_v40 = vpop.eup %2814 }
 0x51f   :  { %v1021_v41 = vmul.f32 %v2815_v40, %v2813_v37 }
 0x521   :  { %v1022_v43 = vpack.c.bf16 %v1021_v41, %v1021_v41 }
 0x523   :  { %2520 = vmatmul.mubr.msk.bf16.vlgmr.msra.gmra.mrb[20].mxu0 %vm731_vm2, %v1022_v43 }
 0x524   :  { %2524 = vmatpush3.bf16.msra.mxu0 %v2778_v42  ;;  %2527 = vmatprep.mubr.msk.bf16.mxu0 %vm2823_vm4, %v2822_v51 }
 0x525   :  { %2525 = vmatprep.subr.bf16.mxu0 %v2822_v51 }
 0x528   :  { %2526 = vmatpush3.bf16.msra.mxu0 %v2779_v44 }
 0x529   :  { %2543 = vmatprep.subr.bf16.mxu0 %v2822_v51 }
 0x5f6   :  { %v1060_v45 = vpop.f32.mrb[20].mxu0 }
 0x5f7   :  { %v1066_v46 = vadd.f32 %v1060_v45, %v946_v24  ;;  %v2521_v48 = vpop.f32.mrb[21].mxu0 }
 0x5f8   :  { %v1063_v50 = vpop.f32.mrb[22].mxu0 }
 0x5f9   :  { %v1067_v52 = vpack.c.bf16 %v1066_v46, %v1066_v46  ;;  %v2522_v53 = vpop.f32.mrb[23].mxu0 }
 0x5fb   :  { %2528 = vmatmul.mubr.msk.bf16.vlgmr.msra.gmra.mrb[24].mxu0 %vm731_vm2, %v1067_v52 }
 0x5fc   :  { %2547 = vmatprep.mubr.msk.bf16.mxu0 %vm2823_vm4, %v2822_v51  ;;  %2544 = vmatpush3.bf16.msra.mxu0 %v2786_v13 }
 0x5fd   :  { %2545 = vmatprep.subr.bf16.mxu0 %v2822_v51 }
 0x6ce   :  { %v1126_v62 = vpop.f32.mrb[24].mxu0 }
 0x6cf   :  { %v1127_v63 = vadd.f32 %v2289_v61, %v1126_v62  ;;  %v2529_v0 = vpop.f32.mrb[25].mxu0  ;;  %v2792_v62 = vld [vmem:[%s3651_s2 + $0x220] sm:$0xff]  }
 0x6d0   :  { %v1129_v1 = vpop.f32.mrb[26].mxu0  ;;  %v2794_v0 = vld [vmem:[%s3651_s2 + $0x230] sm:$0xff]  }
 0x6d1   :  { %v1132_v58 = vmul.f32 %v1127_v63, %v1127_v63  ;;  %v2530_v47 = vpop.f32.mrb[27].mxu0  ;;  %v2795_v1 = vld [vmem:[%s3651_s2 + $0x238] sm:$0xff]  }
 0x6d2   :  { %v2797_v47 = vld [vmem:[%s3651_s2 + $0x248] sm:$0xff]  }
 0x6d3   :  { %v1133_v2 = vmul.f32 %v1132_v58, %v1127_v63  ;;  %v2796_v58 = vld [vmem:[%s3651_s2 + $0x240] sm:$0xff]  }
 0x6d5   :  { %v1134_v3 = vmul.f32 0.044715, %v1133_v2 }
 0x6d7   :  { %v1135_v60 = vadd.f32 %v1134_v3, %v1127_v63 }
 0x6d9   :  { %v1136_v4 = vmul.f32 0.7978846, %v1135_v60 }
 0x6db   :  { %2816 = vtanh.f32 %v1136_v4 }
 0x6e5   :  { %v2817_v5 = vpop.eup %2816 }
 0x6e6   :  { %v1138_v6 = vadd.f32 1.0, %v2817_v5 }
 0x6e8   :  { %v1139_v7 = vmul.f32 0.5, %v1138_v6 }
 0x6ea   :  { %v1140_v9 = vmul.f32 %v1139_v7, %v1127_v63  ;;  %v2793_v63 = vld [vmem:[%s3651_s2 + $0x228] sm:$0xff]   ;;  %v2798_v7 = vld [vmem:[%s3651_s2 + $0x250] sm:$0xff]  }
 0x6ec   :  { %v1141_v49 = vpack.c.bf16 %v1140_v9, %v1140_v9  ;;  %v2799_v9 = vld [vmem:[%s3651_s2 + $0x258] sm:$0xff]  }
 0x6ee   :  { %2540 = vmatmul.mubr.msk.bf16.vlgmr.msra.gmra.mrb[20].mxu1 %vm857_vm3, %v1141_v49  ;;  %v2824_v49 = vmov 4  }
 0x6ef   :  { %2564 = vmatpush3.bf16.msra.mxu1 %v2784_v59  ;;  %2567 = vmatprep.mubr.msk.bf16.mxu1 %vm731_vm2, %v3134_v11  ;;  %v2787_v11 = vld [vmem:[%s3651_s2 + $0x1e8] sm:$0xff]   ;;  %v1514_v59 = vld [vmem:[%s3651_s2 + $0x260] sm:$0xf] }
 0x6f0   :  { %2565 = vmatprep.subr.bf16.mxu1 %v2785_v10  ;;  %2546 = vmatpush3.bf16.msra.mxu0 %v2787_v11  ;;  %v1523_v61 = vsel %vm945_vm6, %v1514_v59, 0 }
 0x6f1   :  { %2551 = vmatprep.subr.bf16.mxu0 %v2822_v51  ;;  %2643 = vset.pattern.permute.xlu0 %v2824_v49 }
 0x6f3   :  { %2566 = vmatpush3.bf16.msra.mxu1 %v2785_v10  ;;  %v2825_v10 = vmov 0  }
 0x6f4   :  { %2640 = vset.pattern.permute.xlu1 %v2825_v10 }
 0x6f6   :  { %2568 = vmatmul.mubr.msk.bf16.vlgmr.msra.gmra.mrb[24].mxu1 %vm731_vm2, %v3129_v8 }
 0x6f7   :  { %2573 = vmatprep.mubr.msk.bf16.mxu1 %vm36_vm1, %v2820_v12  ;;  %v2309_v12 = vld [vmem:[%s3653_s3 + $0x38] ss:$0 sm:$0xff] }
 0x7c1   :  { %v1211_v8 = vpop.f32.mrb[20].mxu1 }
 0x7c2   :  { %v1217_v15 = vadd.f32 %v1211_v8, %v1066_v46  ;;  %v2541_v16 = vpop.f32.mrb[21].mxu1  ;;  %v2303_v46 = vld [vmem:[%s3653_s3 + $0x30] ss:$0 sm:$0xff] }
 0x7c3   :  { %v1214_v17 = vpop.f32.mrb[22].mxu1 }
 0x7c4   :  { %v1223_v18 = vadd.f32 %v2298_v14, %v1217_v15  ;;  %v2542_v19 = vpop.f32.mrb[23].mxu1 }
 0x7c6   :  { %v1225_v20 = vrot.slane %v1223_v18, 2 }
 0x7c8   :  { %v1227_v21 = vsel %vm43_vm0, %v1223_v18, %v1225_v20 }
 0x7c9   :  { %v1228_v22 = vpack.c.bf16 %v1227_v21, %v1227_v21  ;;  %v3211_v23 = vpop.f32.mrb[24].mxu1 }
 0x7ca   :  { %v3213_v24 = vpop.f32.mrb[25].mxu1  ;;  %v1453_v13 = vadd.f32 %v3211_v23, %v2309_v12 }
 0x7cb   :  { %2548 = vmatmul.mubr.msk.bf16.vlgmr.msra.gmra.mrb[28].mxu0 %vm731_vm2, %v1228_v22  ;;  %v3216_v25 = vpop.f32.mrb[26].mxu1  ;;  %v1445_v11 = vadd.f32 %v2309_v12, %v3213_v24 }
 0x7cc   :  { %v3218_v26 = vpop.f32.mrb[27].mxu1  ;;  %2559 = vmatprep.mubr.msk.bf16.mxu0 %vm2823_vm4, %v2822_v51  ;;  %2552 = vmatpush3.bf16.msra.mxu0 %v2788_v27  ;;  %v1456_v14 = vadd.f32 %v3216_v25, %v2309_v12 }
 0x7cd   :  { %2553 = vmatprep.subr.bf16.mxu0 %v2822_v51  ;;  %v1448_v17 = vadd.f32 %v2309_v12, %v3218_v26  ;;  %v2826_v26 = vmov 5  }
 0x7d0   :  { %2554 = vmatpush3.bf16.msra.mxu0 %v2789_v28 }
 0x7d1   :  { %2555 = vmatprep.subr.bf16.mxu0 %v2822_v51 }
 0x7d4   :  { %2556 = vmatpush3.bf16.msra.mxu0 %v2790_v29 }
 0x7d5   :  { %2557 = vmatprep.subr.bf16.mxu0 %v2822_v51 }
 0x7d8   :  { %2558 = vmatpush3.bf16.msra.mxu0 %v2791_v30  ;;  %v2827_v30 = vmov 1  }
 0x7d9   :  { %2621 = vmatprep.subr.msk.bf16.mxu0 %vm945_vm6, %v1514_v59 }
 0x89e   :  { %v1287_v32 = vpop.f32.mrb[28].mxu0 }
 0x89f   :  { %v1288_v33 = vadd.f32 %v2299_v31, %v1287_v32  ;;  %v2549_v34 = vpop.f32.mrb[29].mxu0  ;;  %v2828_v31 = vmov 11   ;;  %v2829_v32 = vmov 2  }
 0x8a0   :  { %v1290_v35 = vpop.f32.mrb[30].mxu0  ;;  %v2831_v34 = vmov 6  }
 0x8a1   :  { %v1293_v36 = vmul.f32 %v1288_v33, %v1288_v33  ;;  %v2550_v37 = vpop.f32.mrb[31].mxu0  ;;  %v2832_v35 = vmov 8  }
 0x8a2   :  { %v2834_v37 = vmov 13  }
 0x8a3   :  { %v1294_v38 = vmul.f32 %v1293_v36, %v1288_v33  ;;  %v2833_v36 = vmov 7  }
 0x8a5   :  { %v1295_v39 = vmul.f32 0.044715, %v1294_v38  ;;  %v2835_v38 = vmov 9  }
 0x8a7   :  { %v1296_v40 = vadd.f32 %v1295_v39, %v1288_v33  ;;  %v2836_v39 = vmov 14  }
 0x8a9   :  { %v1297_v41 = vmul.f32 0.7978846, %v1296_v40  ;;  %v2837_v40 = vmov 10  }
 0x8ab   :  { %2818 = vtanh.f32 %v1297_v41  ;;  %v2838_v41 = vmov 15  }
 0x8b5   :  { %v2819_v51 = vpop.eup %2818 }
 0x8b6   :  { %v1299_v42 = vadd.f32 1.0, %v2819_v51  ;;  %v2839_v51 = vmov 12  }
 0x8b8   :  { %v1300_v43 = vmul.f32 0.5, %v1299_v42 }
 0x8ba   :  { %v1301_v44 = vmul.f32 %v1300_v43, %v1288_v33  ;;  %v2830_v33 = vmov 3  }
 0x8bc   :  { %v1302_v45 = vpack.c.bf16 %v1301_v44, %v1301_v44 }
 0x8be   :  { %2560 = vmatmul.mubr.msk.bf16.vlgmr.msra.gmra.mrb[32].mxu0 %vm857_vm3, %v1302_v45 }
 0x8bf   :  { %2578 = vmatpush3.bf16.msra.mxu0 %v1523_v61 }
 0x991   :  { %v1377_v48 = vpop.f32.mrb[32].mxu0 }
 0x992   :  { %v1378_v50 = vadd.f32 %v2303_v46, %v1377_v48  ;;  %v2561_v52 = vpop.f32.mrb[33].mxu0 }
 0x993   :  { %v1380_v53 = vpop.f32.mrb[34].mxu0 }
 0x994   :  { %v1459_v54 = vpack.c.bf16 %v1378_v50, %v1378_v50  ;;  %v2562_v55 = vpop.f32.mrb[35].mxu0 }
 0x996   :  { %v1461_v56 = vsel %vm43_vm0, %v1459_v54, 0  ;;  %2620 = vmatprep.subr.msk.bf16.mxu1 %vm43_vm0, %v1459_v54 }
 0x997   :  { %2572 = vmatpush3.bf16.msra.mxu1 %v1461_v56 }
 0x998   :  { %2583 = vmatprep.subr.bf16.mxu1 %v2792_v62 }
 0x99a   :  { %2574 = vmatmul.mubr.msk.bf16.vlgmr.msra.gmra.mrb[28].mxu1 %vm36_vm1, %v2821_v57 }
 0x99b   :  { %2584 = vmatpush3.bf16.msra.mxu1 %v2792_v62  ;;  %v3419_v62 = vld [vmem:[%s3653_s3 + $0x80] sm:$0xff] }
 0x99c   :  { %2585 = vmatprep.subr.bf16.mxu1 %v2793_v63 }
 0x99f   :  { %2586 = vmatpush3.bf16.msra.mxu1 %v2793_v63 }
 0x9a0   :  { %2587 = vmatprep.subr.bf16.mxu1 %v2794_v0 }
 0x9a3   :  { %2588 = vmatpush3.bf16.msra.mxu1 %v2794_v0  ;;  %v3424_v0 = vld [vmem:[%s3653_s3 + $0x70] sm:$0xff] }
 0x9a4   :  { %2589 = vmatprep.subr.bf16.mxu1 %v2795_v1 }
 0x9a7   :  { %2590 = vmatpush3.bf16.msra.mxu1 %v2795_v1 }
 0x9a8   :  { %2591 = vmatprep.subr.bf16.mxu1 %v2796_v58 }
 0x9ab   :  { %2592 = vmatpush3.bf16.msra.mxu1 %v2796_v58 }
 0x9ac   :  { %2593 = vmatprep.subr.bf16.mxu1 %v2797_v47 }
 0x9af   :  { %2594 = vmatpush3.bf16.msra.mxu1 %v2797_v47  ;;  %v3433_v47 = vld [vmem:[%s3653_s3 + $0x90] sm:$0xff] }
 0x9b0   :  { %2595 = vmatprep.subr.bf16.mxu1 %v2798_v7 }
 0x9b3   :  { %2596 = vmatpush3.bf16.msra.mxu1 %v2798_v7 }
 0x9b4   :  { %2597 = vmatprep.subr.bf16.mxu1 %v2799_v9 }
 0x9b7   :  { %2598 = vmatpush3.bf16.msra.mxu1 %v2799_v9 }
 0xa6d   :  { %v2575_v2 = vpop.f32.mrb[28].mxu1 }
 0xa6e   :  { %v1497_v3 = vpop.f32.mrb[29].mxu1 }
 0xa6f   :  { %v2576_v60 = vpop.f32.mrb[30].mxu1 }
 0xa70   :  { %v1513_v4 = vpack.c.bf16 %v2576_v60, %v2575_v2  ;;  %v1500_v5 = vpop.f32.mrb[31].mxu1 }
 0xa71   :  { %v1512_v6 = vpack.c.bf16 %v1500_v5, %v1497_v3  ;;  %v3441_v5 = vld [vmem:[%s3653_s3 + $0xb0] sm:$0xff] }
 0xa73   :  { %2579 = vmatprep.mubr.msk.bf16.mxu0 %vm1515_vm8, %v1512_v6  ;;  %v3446_v6 = vld [vmem:[%s3653_s3 + $0xa0] sm:$0xff] }
 0xa74   :  { %2580 = vmatmul.mubr.msk.bf16.vlgmr.msra.gmra.mrb[36].mxu0 %vm1515_vm8, %v1513_v4 }
 0xb47   :  { %v2581_v8 = vpop.f32.mrb[36].mxu0 }
 0xb48   :  { %v1576_v15 = vmul.f32 %v2581_v8, %v1453_v13  ;;  %v1559_v16 = vpop.f32.mrb[37].mxu0  ;;  %v3460_v13 = vld [vmem:[%s3653_s3 + $0xd0] sm:$0xff] }
 0xb49   :  { %v1574_v18 = vmul.f32 %v1559_v16, %v1445_v11  ;;  %v2582_v19 = vpop.f32.mrb[38].mxu0 }
 0xb4a   :  { %v1577_v20 = vmul.f32 %v2582_v19, %v1456_v14  ;;  %v1562_v21 = vpop.f32.mrb[39].mxu0 }
 0xb4b   :  { %v1575_v22 = vmul.f32 %v1562_v21, %v1448_v17  ;;  %v3468_v17 = vld [vmem:[%s3653_s3 + $0xe0] sm:$0xff] }
 0xb4c   :  { %v1579_v27 = vpack.c.bf16 %v1577_v20, %v1576_v15 }
 0xb4d   :  { %v1578_v28 = vpack.c.bf16 %v1575_v22, %v1574_v18 }
 0xb4f   :  { %2599 = vmatprep.mubr.bf16.mxu1 %v1578_v28 }
 0xb50   :  { %2600 = vmatmul.mubr.bf16.vlgmr.msra.gmra.mrb[32].mxu1 %v1579_v27 }
 0xc23   :  { %v3288_v29 = vpop.f32.mrb[32].mxu1 }
 0xc24   :  { %1854 = vperm.xlu0 %2643, %v3288_v29   ;;  %1759 = vperm.xlu1 %2640, %v3288_v29   ;;  %v3292_v23 = vpop.f32.mrb[33].mxu1 }
 0xc25   :  { %v3294_v24 = vpop.f32.mrb[34].mxu1 }
 0xc26   :  { %v3296_v25 = vpop.f32.mrb[35].mxu1 }
 0xc28   :  { %2645 = vset.pattern.permute.xlu0 %v2826_v26  ;;  %2641 = vset.pattern.permute.xlu1 %v2827_v30 }
 0xc29   :  { %1866 = vperm.xlu0 %2645, %v3288_v29   ;;  %1772 = vperm.xlu1 %2641, %v3288_v29  }
 0xc2d   :  { %2652 = vset.pattern.permute.xlu0 %v2828_v31  ;;  %2642 = vset.pattern.permute.xlu1 %v2829_v32 }
 0xc2e   :  { %1984 = vperm.xlu0 %2652, %v3288_v29   ;;  %1784 = vperm.xlu1 %2642, %v3288_v29  }
 0xc32   :  { %2655 = vset.pattern.permute.xlu0 %v2827_v30  ;;  %2644 = vset.pattern.permute.xlu1 %v2830_v33 }
 0xc33   :  { %1796 = vperm.xlu1 %2644, %v3288_v29   ;;  %1722 = vperm.xlu0 %2655, %v3292_v23  }
 0xc37   :  { %2646 = vset.pattern.permute.xlu1 %v2831_v34  ;;  %2660 = vset.pattern.permute.xlu0 %v2831_v34 }
 0xc38   :  { %1878 = vperm.xlu1 %2646, %v3288_v29   ;;  %1830 = vperm.xlu0 %2660, %v3292_v23  }
 0xc3c   :  { %2647 = vset.pattern.permute.xlu1 %v2832_v35  ;;  %2662 = vset.pattern.permute.xlu0 %v2832_v35 }
 0xc3d   :  { %1948 = vperm.xlu1 %2647, %v3288_v29   ;;  %1902 = vperm.xlu0 %2662, %v3292_v23  }
 0xc41   :  { %2648 = vset.pattern.permute.xlu1 %v2833_v36  ;;  %2667 = vset.pattern.permute.xlu0 %v2834_v37 }
 0xc42   :  { %1890 = vperm.xlu1 %2648, %v3288_v29   ;;  %2006 = vperm.xlu0 %2667, %v3292_v23  }
 0xc46   :  { %2649 = vset.pattern.permute.xlu1 %v2835_v38  ;;  %2668 = vset.pattern.permute.xlu0 %v2836_v39 }
 0xc47   :  { %1960 = vperm.xlu1 %2649, %v3288_v29   ;;  %2018 = vperm.xlu0 %2668, %v3292_v23  }
 0xc4b   :  { %2650 = vset.pattern.permute.xlu1 %v2837_v40  ;;  %2669 = vset.pattern.permute.xlu0 %v2838_v41 }
 0xc4c   :  { %1972 = vperm.xlu1 %2650, %v3288_v29   ;;  %2030 = vperm.xlu0 %2669, %v3292_v23  }
 0xc50   :  { %2651 = vset.pattern.permute.xlu1 %v2839_v51  ;;  %2671 = vset.pattern.permute.xlu0 %v2827_v30 }
 0xc51   :  { %2042 = vperm.xlu1 %2651, %v3288_v29   ;;  %1776 = vperm.xlu0 %2671, %v3294_v24  }
 0xc55   :  { %2653 = vset.pattern.permute.xlu1 %v2834_v37  ;;  %2676 = vset.pattern.permute.xlu0 %v2831_v34 }
 0xc56   :  { %2054 = vperm.xlu1 %2653, %v3288_v29   ;;  %1882 = vperm.xlu0 %2676, %v3294_v24  }
 0xc5a   :  { %2654 = vset.pattern.permute.xlu1 %v2825_v10  ;;  %2678 = vset.pattern.permute.xlu0 %v2833_v36 }
 0xc5b   :  { %1711 = vperm.xlu1 %2654, %v3292_v23   ;;  %1894 = vperm.xlu0 %2678, %v3294_v24  }
 0xc5f   :  { %2656 = vset.pattern.permute.xlu1 %v2829_v32  ;;  %2680 = vset.pattern.permute.xlu0 %v2837_v40 }
 0xc60   :  { %1734 = vperm.xlu1 %2656, %v3292_v23   ;;  %1976 = vperm.xlu0 %2680, %v3294_v24  }
 0xc64   :  { %2657 = vset.pattern.permute.xlu1 %v2830_v33  ;;  %2692 = vset.pattern.permute.xlu0 %v2835_v38 }
 0xc65   :  { %1746 = vperm.xlu1 %2657, %v3292_v23   ;;  %1916 = vperm.xlu0 %2692, %v3296_v25  }
 0xc69   :  { %2658 = vset.pattern.permute.xlu1 %v2824_v49  ;;  %2693 = vset.pattern.permute.xlu0 %v2837_v40 }
 0xc6a   :  { %1808 = vperm.xlu1 %2658, %v3292_v23   ;;  %1928 = vperm.xlu0 %2693, %v3296_v25  }
 0xc6e   :  { %2659 = vset.pattern.permute.xlu1 %v2826_v26  ;;  %2694 = vset.pattern.permute.xlu0 %v2828_v31 }
 0xc6f   :  { %1818 = vperm.xlu1 %2659, %v3292_v23   ;;  %1940 = vperm.xlu0 %2694, %v3296_v25  }
 0xc73   :  { %2661 = vset.pattern.permute.xlu1 %v2833_v36  ;;  %2695 = vset.pattern.permute.xlu0 %v2834_v37 }
 0xc74   :  { %1842 = vperm.xlu1 %2661, %v3292_v23   ;;  %2058 = vperm.xlu0 %2695, %v3294_v24  }
 0xc78   :  { %2663 = vset.pattern.permute.xlu1 %v2835_v38  ;;  %2702 = vset.pattern.permute.xlu0 %v2838_v41 }
 0xc79   :  { %1912 = vperm.xlu1 %2663, %v3292_v23   ;;  %2078 = vperm.xlu0 %2702, %v3288_v29  }
 0xc7d   :  { %2664 = vset.pattern.permute.xlu1 %v2837_v40 }
 0xc7e   :  { %1924 = vperm.xlu1 %2664, %v3292_v23  }
 0xc82   :  { %2665 = vset.pattern.permute.xlu1 %v2828_v31 }
 0xc83   :  { %1936 = vperm.xlu1 %2665, %v3292_v23  }
 0xc87   :  { %2666 = vset.pattern.permute.xlu1 %v2839_v51 }
 0xc88   :  { %1996 = vperm.xlu1 %2666, %v3292_v23  }
 0xc8c   :  { %2670 = vset.pattern.permute.xlu1 %v2825_v10 }
 0xc8d   :  { %1764 = vperm.xlu1 %2670, %v3294_v24  }
 0xc91   :  { %2672 = vset.pattern.permute.xlu1 %v2829_v32 }
 0xc92   :  { %1788 = vperm.xlu1 %2672, %v3294_v24  }
 0xc96   :  { %2673 = vset.pattern.permute.xlu1 %v2824_v49 }
 0xc97   :  { %1858 = vperm.xlu1 %2673, %v3294_v24  }
 0xc9b   :  { %2674 = vset.pattern.permute.xlu1 %v2830_v33 }
 0xc9c   :  { %1800 = vperm.xlu1 %2674, %v3294_v24  }
 0xca0   :  { %2675 = vset.pattern.permute.xlu1 %v2826_v26 }
 0xca1   :  { %1870 = vperm.xlu1 %2675, %v3294_v24  }
 0xca3   :  { %v1760_v42 = vpop.permute.xlu1 %1759  ;;  %v1855_v53 = vpop.permute.xlu0 %1854 }
 0xca5   :  { %2677 = vset.pattern.permute.xlu1 %v2832_v35 }
 0xca6   :  { %1952 = vperm.xlu1 %2677, %v3294_v24  }
 0xca8   :  { %v1773_v43 = vpop.permute.xlu1 %1772  ;;  %v1867_v55 = vpop.permute.xlu0 %1866 }
 0xcaa   :  { %2679 = vset.pattern.permute.xlu1 %v2835_v38 }
 0xcab   :  { %1964 = vperm.xlu1 %2679, %v3294_v24  }
 0xcad   :  { %v1785_v44 = vpop.permute.xlu1 %1784  ;;  %v3410_v57 = vpop.permute.xlu0 %1984 }
 0xcae   :  { %v1791_v15 = vmul.f32 %v1785_v44, %v3460_v13 }
 0xcaf   :  { %2681 = vset.pattern.permute.xlu1 %v2839_v51 }
 0xcb0   :  { %2046 = vperm.xlu1 %2681, %v3294_v24  }
 0xcb2   :  { %v1797_v45 = vpop.permute.xlu1 %1796  ;;  %v1723_v63 = vpop.permute.xlu0 %1722 }
 0xcb3   :  { %v1729_v58 = vmul.f32 %v1723_v63, %v3419_v62  ;;  %v1803_v18 = vmul.f32 %v1797_v45, %v3468_v17 }
 0xcb4   :  { %2682 = vset.pattern.permute.xlu1 %v2828_v31 }
 0xcb5   :  { %1988 = vperm.xlu1 %2682, %v3294_v24  }
 0xcb7   :  { %v3386_v46 = vpop.permute.xlu1 %1878  ;;  %v1831_v20 = vpop.permute.xlu0 %1830 }
 0xcb8   :  { %v1885_v38 = vmul.f32 %v3386_v46, %v3460_v13 }
 0xcb9   :  { %2683 = vset.pattern.permute.xlu1 %v2825_v10  ;;  %v1767_v10 = vmul.f32 %v1760_v42, %v3441_v5 }
 0xcba   :  { %1716 = vperm.xlu1 %2683, %v3296_v25  }
 0xcbc   :  { %v3390_v48 = vpop.permute.xlu1 %1948 }
 0xcbe   :  { %2684 = vset.pattern.permute.xlu1 %v2827_v30 }
 0xcbf   :  { %1726 = vperm.xlu1 %2684, %v3296_v25  }
 0xcc1   :  { %v3394_v50 = vpop.permute.xlu1 %1890 }
 0xcc3   :  { %2685 = vset.pattern.permute.xlu1 %v2829_v32  ;;  %v1861_v32 = vmul.f32 %v1855_v53, %v3441_v5 }
 0xcc4   :  { %1738 = vperm.xlu1 %2685, %v3296_v25  }
 0xcc6   :  { %v3398_v52 = vpop.permute.xlu1 %1960 }
 0xcc8   :  { %2686 = vset.pattern.permute.xlu1 %v2830_v33 }
 0xcc9   :  { %1750 = vperm.xlu1 %2686, %v3296_v25  }
 0xccb   :  { %v3402_v54 = vpop.permute.xlu1 %1972 }
 0xccd   :  { %2687 = vset.pattern.permute.xlu1 %v2824_v49  ;;  %v3452_v49 = vld [vmem:[%s3653_s3 + $0xc0] sm:$0xff] }
 0xcce   :  { %1812 = vperm.xlu1 %2687, %v3296_v25   ;;  %v1779_v11 = vmul.f32 %v1773_v43, %v3452_v49  ;;  %v1897_v43 = vmul.f32 %v3394_v50, %v3468_v17  ;;  %v1955_v50 = vmul.f32 %v3390_v48, %v3441_v5 }
 0xcd0   :  { %v3406_v56 = vpop.permute.xlu1 %2042 }
 0xcd2   :  { %2688 = vset.pattern.permute.xlu1 %v2826_v26 }
 0xcd3   :  { %1822 = vperm.xlu1 %2688, %v3296_v25  }
 0xcd5   :  { %v3412_v59 = vpop.permute.xlu1 %2054 }
 0xcd7   :  { %2689 = vset.pattern.permute.xlu1 %v2831_v34  ;;  %v1903_v34 = vpop.permute.xlu0 %1902 }
 0xcd8   :  { %1834 = vperm.xlu1 %2689, %v3296_v25   ;;  %v1909_v42 = vmul.f32 %v1903_v34, %v3424_v0 }
 0xcda   :  { %v1712_v61 = vpop.permute.xlu1 %1711 }
 0xcdb   :  { %v1719_v1 = vmul.f32 %v1712_v61, %v3424_v0  ;;  %v2007_v45 = vpop.permute.xlu0 %2006 }
 0xcdc   :  { %2690 = vset.pattern.permute.xlu1 %v2833_v36 }
 0xcdd   :  { %1846 = vperm.xlu1 %2690, %v3296_v25   ;;  %v1731_v3 = vadd.f32 %v1729_v58, %v1719_v1 }
 0xcdf   :  { %v1735_v2 = vpop.permute.xlu1 %1734 }
 0xce0   :  { %v1741_v60 = vmul.f32 %v1735_v2, %v3433_v47 }
 0xce1   :  { %2691 = vset.pattern.permute.xlu1 %v2832_v35  ;;  %v1873_v35 = vmul.f32 %v1867_v55, %v3452_v49 }
 0xce2   :  { %v1743_v4 = vadd.f32 %v1741_v60, %v1731_v3  ;;  %1906 = vperm.xlu1 %2691, %v3296_v25   ;;  %v1967_v3 = vmul.f32 %v3398_v52, %v3452_v49 }
 0xce4   :  { %v1747_v7 = vpop.permute.xlu1 %1746 }
 0xce5   :  { %v1753_v9 = vmul.f32 %v1747_v7, %v3446_v6 }
 0xce6   :  { %2696 = vset.pattern.permute.xlu1 %v2836_v39 }
 0xce7   :  { %v1755_v12 = vadd.f32 %v1753_v9, %v1743_v4  ;;  %2066 = vperm.xlu1 %2696, %v3288_v29   ;;  %v1837_v29 = vmul.f32 %v1831_v20, %v3433_v47  ;;  %v2013_v4 = vmul.f32 %v2007_v45, %v3419_v62  ;;  %v1979_v9 = vmul.f32 %v3402_v54, %v3460_v13 }
 0xce8   :  { %v2061_v54 = vmul.f32 %v3412_v59, %v3452_v49  ;;  %v3533_v59 = vld [vmem:[%s3653_s3 + $0x88] sm:$0xff]  ;;  %v3538_v49 = vld [vmem:[%s3653_s3 + $0x78] sm:$0xff] }
 0xce9   :  { %v1769_v8 = vadd.f32 %v1767_v10, %v1755_v12  ;;  %v1809_v14 = vpop.permute.xlu1 %1808 }
 0xcea   :  { %v1815_v22 = vmul.f32 %v1809_v14, %v3424_v0 }
 0xceb   :  { %v1781_v16 = vadd.f32 %v1779_v11, %v1769_v8  ;;  %2697 = vset.pattern.permute.xlu1 %v2839_v51 }
 0xcec   :  { %2000 = vperm.xlu1 %2697, %v3296_v25  }
 0xced   :  { %v1793_v19 = vadd.f32 %v1791_v15, %v1781_v16 }
 0xcee   :  { %v1819_v21 = vpop.permute.xlu1 %1818 }
 0xcef   :  { %v1825_v27 = vmul.f32 %v1819_v21, %v3419_v62  ;;  %v3474_v28 = vadd.f32 %v1803_v18, %v1793_v19 }
 0xcf0   :  { %2698 = vset.pattern.permute.xlu1 %v2834_v37 }
 0xcf1   :  { %v1827_v23 = vadd.f32 %v1825_v27, %v1815_v22  ;;  %2010 = vperm.xlu1 %2698, %v3296_v25  }
 0xcf3   :  { %v1839_v26 = vadd.f32 %v1837_v29, %v1827_v23  ;;  %v1843_v30 = vpop.permute.xlu1 %1842 }
 0xcf4   :  { %v1849_v31 = vmul.f32 %v1843_v30, %v3446_v6  ;;  %v3544_v30 = vld [vmem:[%s3653_s3 + $0x98] sm:$0xff] }
 0xcf5   :  { %2699 = vset.pattern.permute.xlu1 %v2836_v39 }
 0xcf6   :  { %v1851_v33 = vadd.f32 %v1849_v31, %v1839_v26  ;;  %2022 = vperm.xlu1 %2699, %v3296_v25  }
 0xcf8   :  { %v1863_v36 = vadd.f32 %v1861_v32, %v1851_v33  ;;  %v1913_v37 = vpop.permute.xlu1 %1912 }
 0xcf9   :  { %v1919_v51 = vmul.f32 %v1913_v37, %v3419_v62  ;;  %v2800_v62 = vld [vmem:[%s3651_s2 + $0x278] sm:$0xff]  }
 0xcfa   :  { %v1875_v40 = vadd.f32 %v1873_v35, %v1863_v36  ;;  %2700 = vset.pattern.permute.xlu1 %v2838_v41  ;;  %2611 = vmatprep.mubr.msk.bf16.mxu0 %vm857_vm3, %v2800_v62  ;;  %v3551_v35 = vld [vmem:[%s3653_s3 + $0xa8] sm:$0xff]  ;;  %v3556_v36 = vld [vmem:[%s3653_s3 + $0xb8] sm:$0xff] }
 0xcfb   :  { %2034 = vperm.xlu1 %2700, %v3296_v25   ;;  %v1921_v55 = vadd.f32 %v1919_v51, %v1909_v42  ;;  %v2019_v25 = vpop.permute.xlu0 %2018  ;;  %v3562_v51 = vld [vmem:[%s3653_s3 + $0xc8] sm:$0xff] }
 0xcfc   :  { %v1887_v44 = vadd.f32 %v1885_v38, %v1875_v40  ;;  %v2025_v12 = vmul.f32 %v2019_v25, %v3433_v47  ;;  %v3575_v25 = vld [vmem:[%s3653_s3 + $0xe8] sm:$0xff] }
 0xcfd   :  { %v1925_v53 = vpop.permute.xlu1 %1924 }
 0xcfe   :  { %v1931_v61 = vmul.f32 %v1925_v53, %v3433_v47  ;;  %v3493_v63 = vadd.f32 %v1897_v43, %v1887_v44 }
 0xcff   :  { %2701 = vset.pattern.permute.xlu1 %v2836_v39  ;;  %v2031_v10 = vpop.permute.xlu0 %2030 }
 0xd00   :  { %v1933_v46 = vadd.f32 %v1931_v61, %v1921_v55  ;;  %2070 = vperm.xlu1 %2701, %v3294_v24   ;;  %v3569_v61 = vld [vmem:[%s3653_s3 + $0xd8] sm:$0xff] }
 0xd02   :  { %v1937_v1 = vpop.permute.xlu1 %1936 }
 0xd03   :  { %v1943_v58 = vmul.f32 %v1937_v1, %v3446_v6  ;;  %v1777_v29 = vpop.permute.xlu0 %1776 }
 0xd04   :  { %2703 = vset.pattern.permute.xlu1 %v2838_v41  ;;  %v1780_v45 = vmul.f32 %v1777_v29, %v3562_v51 }
 0xd05   :  { %v1945_v2 = vadd.f32 %v1943_v58, %v1933_v46  ;;  %2082 = vperm.xlu1 %2703, %v3294_v24   ;;  %v2037_v24 = vmul.f32 %v2031_v10, %v3446_v6 }
 0xd07   :  { %v1957_v60 = vadd.f32 %v1955_v50, %v1945_v2  ;;  %v1997_v39 = vpop.permute.xlu1 %1996  ;;  %v1883_v31 = vpop.permute.xlu0 %1882 }
 0xd08   :  { %v2003_v7 = vmul.f32 %v1997_v39, %v3424_v0  ;;  %v2049_v0 = vmul.f32 %v3406_v56, %v3441_v5 }
 0xd09   :  { %v1969_v41 = vadd.f32 %v1967_v3, %v1957_v60 }
 0xd0a   :  { %v2015_v48 = vadd.f32 %v2013_v4, %v2003_v7 }
 0xd0b   :  { %v3509_v11 = vadd.f32 %v1979_v9, %v1969_v41  ;;  %v1895_v42 = vpop.permute.xlu0 %1894 }
 0xd0c   :  { %v2027_v8 = vadd.f32 %v2025_v12, %v2015_v48  ;;  %v1765_v52 = vpop.permute.xlu1 %1764 }
 0xd0d   :  { %v1768_v43 = vmul.f32 %v1765_v52, %v3556_v36 }
 0xd0e   :  { %v2039_v14 = vadd.f32 %v2037_v24, %v2027_v8 }
 0xd0f   :  { %v1977_v58 = vpop.permute.xlu0 %1976 }
 0xd10   :  { %v2051_v47 = vadd.f32 %v2049_v0, %v2039_v14 }
 0xd11   :  { %v1789_v15 = vpop.permute.xlu1 %1788 }
 0xd12   :  { %v3520_v16 = vadd.f32 %v2061_v54, %v2051_v47  ;;  %v1792_v46 = vmul.f32 %v1789_v15, %v3569_v61 }
 0xd13   :  { %v1917_v4 = vpop.permute.xlu0 %1916 }
 0xd14   :  { %v1920_v47 = vmul.f32 %v1917_v4, %v3533_v59 }
 0xd16   :  { %v1859_v6 = vpop.permute.xlu1 %1858 }
 0xd17   :  { %v1929_v24 = vpop.permute.xlu0 %1928  ;;  %v1862_v62 = vmul.f32 %v1859_v6, %v3556_v36 }
 0xd18   :  { %v1932_v29 = vmul.f32 %v1929_v24, %v3544_v30 }
 0xd1b   :  { %v1801_v18 = vpop.permute.xlu1 %1800 }
 0xd1c   :  { %v1804_v50 = vmul.f32 %v1801_v18, %v3575_v25  ;;  %v1886_v18 = vmul.f32 %v1883_v31, %v3569_v61 }
 0xd20   :  { %v1871_v19 = vpop.permute.xlu1 %1870 }
 0xd25   :  { %v3522_v20 = vpop.permute.xlu1 %1952 }
 0xd2a   :  { %v3524_v21 = vpop.permute.xlu1 %1964 }
 0xd2b   :  { %v1968_v31 = vmul.f32 %v3524_v21, %v3562_v51 }
 0xd2f   :  { %v3526_v22 = vpop.permute.xlu1 %2046 }
 0xd34   :  { %v3528_v56 = vpop.permute.xlu1 %1988 }
 0xd39   :  { %v1717_v5 = vpop.permute.xlu1 %1716 }
 0xd3a   :  { %v1720_v32 = vmul.f32 %v1717_v5, %v3538_v49  ;;  %v1941_v5 = vpop.permute.xlu0 %1940 }
 0xd3b   :  { %v1944_v6 = vmul.f32 %v1941_v5, %v3551_v35 }
 0xd3e   :  { %v1727_v27 = vpop.permute.xlu1 %1726  ;;  %v2059_v4 = vpop.permute.xlu0 %2058 }
 0xd3f   :  { %v1730_v23 = vmul.f32 %v1727_v27, %v3533_v59 }
 0xd41   :  { %v1732_v34 = vadd.f32 %v1730_v23, %v1720_v32 }
 0xd43   :  { %v1739_v26 = vpop.permute.xlu1 %1738 }
 0xd44   :  { %v1742_v33 = vmul.f32 %v1739_v26, %v3544_v30  ;;  %v1898_v26 = vmul.f32 %v1895_v42, %v3575_v25  ;;  %v1980_v42 = vmul.f32 %v1977_v58, %v3569_v61 }
 0xd46   :  { %v1744_v38 = vadd.f32 %v1742_v33, %v1732_v34 }
 0xd48   :  { %v1751_v37 = vpop.permute.xlu1 %1750 }
 0xd49   :  { %v1754_v40 = vmul.f32 %v1751_v37, %v3551_v35  ;;  %v1956_v37 = vmul.f32 %v3522_v20, %v3556_v36 }
 0xd4b   :  { %v1756_v44 = vadd.f32 %v1754_v40, %v1744_v38 }
 0xd4d   :  { %v1770_v53 = vadd.f32 %v1768_v43, %v1756_v44  ;;  %v1813_v55 = vpop.permute.xlu1 %1812 }
 0xd4e   :  { %v1816_v10 = vmul.f32 %v1813_v55, %v3538_v49  ;;  %v1992_v55 = vmul.f32 %v3528_v56, %v3575_v25 }
 0xd4f   :  { %v1782_v1 = vadd.f32 %v1780_v45, %v1770_v53  ;;  %v1991_v53 = vmul.f32 %v3410_v57, %v3468_v17 }
 0xd51   :  { %v1794_v2 = vadd.f32 %v1792_v46, %v1782_v1 }
 0xd52   :  { %v1823_v3 = vpop.permute.xlu1 %1822 }
 0xd53   :  { %v1806_v60 = vadd.f32 %v1804_v50, %v1794_v2  ;;  %v1826_v7 = vmul.f32 %v1823_v3, %v3533_v59 }
 0xd55   :  { %v2097_v39 = vpack.c.bf16 %v1806_v60, %v3474_v28  ;;  %v1828_v12 = vadd.f32 %v1826_v7, %v1816_v10  ;;  %v1874_v28 = vmul.f32 %v1871_v19, %v3562_v51 }
 0xd57   :  { %2603 = vmatprep.subr.bf16.mxu0 %v2097_v39  ;;  %v1835_v9 = vpop.permute.xlu1 %1834 }
 0xd58   :  { %2604 = vmatpush3.bf16.msra.mxu0 %v2097_v39  ;;  %v1838_v41 = vmul.f32 %v1835_v9, %v3544_v30  ;;  %v2062_v9 = vmul.f32 %v2059_v4, %v3562_v51  ;;  %v2802_v51 = vld [vmem:[%s3651_s2 + $0x288] sm:$0xff]  }
 0xd5a   :  { %v1840_v8 = vadd.f32 %v1838_v41, %v1828_v12 }
 0xd5c   :  { %v1847_v48 = vpop.permute.xlu1 %1846 }
 0xd5d   :  { %v1850_v52 = vmul.f32 %v1847_v48, %v3551_v35 }
 0xd5f   :  { %v1852_v0 = vadd.f32 %v1850_v52, %v1840_v8 }
 0xd61   :  { %v1864_v14 = vadd.f32 %v1862_v62, %v1852_v0  ;;  %v1907_v54 = vpop.permute.xlu1 %1906 }
 0xd62   :  { %v1910_v15 = vmul.f32 %v1907_v54, %v3538_v49 }
 0xd63   :  { %v1876_v27 = vadd.f32 %v1874_v28, %v1864_v14 }
 0xd64   :  { %v1922_v23 = vadd.f32 %v1920_v47, %v1910_v15 }
 0xd65   :  { %v1888_v32 = vadd.f32 %v1886_v18, %v1876_v27 }
 0xd66   :  { %v1934_v33 = vadd.f32 %v1932_v29, %v1922_v23  ;;  %v2067_v19 = vpop.permute.xlu1 %2066 }
 0xd67   :  { %v1900_v34 = vadd.f32 %v1898_v26, %v1888_v32 }
 0xd68   :  { %v1946_v38 = vadd.f32 %v1944_v6, %v1934_v33 }
 0xd69   :  { %v2098_v40 = vpack.c.bf16 %v1900_v34, %v3493_v63  ;;  %v1993_v63 = vadd.f32 %v1991_v53, %v3509_v11  ;;  %v2050_v11 = vmul.f32 %v3526_v22, %v3556_v36 }
 0xd6a   :  { %v1958_v43 = vadd.f32 %v1956_v37, %v1946_v38 }
 0xd6b   :  { %2605 = vmatprep.subr.bf16.mxu0 %v2098_v40  ;;  %v2001_v44 = vpop.permute.xlu1 %2000 }
 0xd6c   :  { %2606 = vmatpush3.bf16.msra.mxu0 %v2098_v40  ;;  %v1970_v45 = vadd.f32 %v1968_v31, %v1958_v43  ;;  %v2004_v58 = vmul.f32 %v2001_v44, %v3538_v49 }
 0xd6e   :  { %v1982_v20 = vadd.f32 %v1980_v42, %v1970_v45 }
 0xd70   :  { %v2011_v46 = vpop.permute.xlu1 %2010  ;;  %v1994_v1 = vadd.f32 %v1992_v55, %v1982_v20 }
 0xd71   :  { %v2014_v21 = vmul.f32 %v2011_v46, %v3533_v59  ;;  %v2073_v59 = vmul.f32 %v2067_v19, %v3460_v13  ;;  %v2801_v13 = vld [vmem:[%s3651_s2 + $0x280] sm:$0xff]  }
 0xd72   :  { %v2099_v50 = vpack.c.bf16 %v1994_v1, %v1993_v63 }
 0xd73   :  { %v2016_v60 = vadd.f32 %v2014_v21, %v2004_v58  ;;  %v2075_v48 = vadd.f32 %v2073_v59, %v3520_v16 }
 0xd74   :  { %2607 = vmatprep.subr.bf16.mxu0 %v2099_v50 }
 0xd75   :  { %2608 = vmatpush3.bf16.msra.mxu0 %v2099_v50  ;;  %v2023_v2 = vpop.permute.xlu1 %2022 }
 0xd76   :  { %v2026_v3 = vmul.f32 %v2023_v2, %v3544_v30  ;;  %v2079_v30 = vpop.permute.xlu0 %2078 }
 0xd78   :  { %v2028_v39 = vadd.f32 %v2026_v3, %v2016_v60 }
 0xd7a   :  { %v2035_v57 = vpop.permute.xlu1 %2034 }
 0xd7b   :  { %v2038_v56 = vmul.f32 %v2035_v57, %v3551_v35  ;;  %v2085_v35 = vmul.f32 %v2079_v30, %v3468_v17  ;;  %v2803_v17 = vld [vmem:[%s3651_s2 + $0x290] sm:$0xff]  }
 0xd7d   :  { %v2040_v7 = vadd.f32 %v2038_v56, %v2028_v39  ;;  %v2087_v22 = vadd.f32 %v2085_v35, %v2075_v48 }
 0xd7f   :  { %v2052_v10 = vadd.f32 %v2050_v11, %v2040_v7  ;;  %v2071_v41 = vpop.permute.xlu1 %2070 }
 0xd80   :  { %v2074_v49 = vmul.f32 %v2071_v41, %v3569_v61 }
 0xd81   :  { %v2064_v12 = vadd.f32 %v2062_v9, %v2052_v10 }
 0xd83   :  { %v2076_v8 = vadd.f32 %v2074_v49, %v2064_v12 }
 0xd84   :  { %v2083_v24 = vpop.permute.xlu1 %2082 }
 0xd85   :  { %v2086_v52 = vmul.f32 %v2083_v24, %v3575_v25 }
 0xd87   :  { %v2088_v36 = vadd.f32 %v2086_v52, %v2076_v8 }
 0xd89   :  { %v2100_v62 = vpack.c.bf16 %v2088_v36, %v2087_v22 }
 0xd8b   :  { %2609 = vmatprep.subr.bf16.mxu0 %v2100_v62 }
 0xd8c   :  { %2610 = vmatpush3.bf16.msra.mxu0 %v2100_v62 }
 0xd8f   :  { %2612 = vmatmul.mubr.msk.bf16.vlgmr.msra.gmra.mrb[40].mxu0 %vm857_vm3, %v2801_v13 }
 0xd90   :  { %2615 = vmatprep.mubr.msk.bf16.mxu0 %vm857_vm3, %v2802_v51 }
 0xd97   :  { %2616 = vmatmul.mubr.msk.bf16.gmra.mrb[44].mxu0 %vm857_vm3, %v2803_v17 }
 0xe62   :  { %v2613_v16 = vpop.f32.mrb[40].mxu0 }
 0xe63   :  { %2200 = vst [vmem:[%s3654_s4 + $0x10] sm:$0xff] %v2613_v16  ;;  %v2167_v61 = vpop.f32.mrb[41].mxu0 }
 0xe64   :  { %2198 = vst [vmem:[%s3654_s4] sm:$0xff] %v2167_v61  ;;  %v2614_v25 = vpop.f32.mrb[42].mxu0 }
 0xe65   :  { %2201 = vst [vmem:[%s3654_s4 + $0x18] sm:$0xff] %v2614_v25  ;;  %v2170_v0 = vpop.f32.mrb[43].mxu0 }
 0xe66   :  { %2199 = vst [vmem:[%s3654_s4 + $0x8] sm:$0xff] %v2170_v0 }
 0xe6a   :  { %v2617_v28 = vpop.f32.mrb[44].mxu0 }
 0xe6b   :  { %2204 = vst [vmem:[%s3654_s4 + $0x30] sm:$0xff] %v2617_v28  ;;  %v2183_v14 = vpop.f32.mrb[45].mxu0 }
 0xe6c   :  { %2202 = vst [vmem:[%s3654_s4 + $0x20] sm:$0xff] %v2183_v14  ;;  %v2618_v54 = vpop.f32.mrb[46].mxu0 }
 0xe6d   :  { %2205 = vst [vmem:[%s3654_s4 + $0x38] sm:$0xff] %v2618_v54  ;;  %v2186_v47 = vpop.f32.mrb[47].mxu0 }
 0xe6e   :  { %2203 = vst [vmem:[%s3654_s4 + $0x28] sm:$0xff] %v2186_v47 }

</bundles_post_ra>
